<compile_context>
chip_gen: v6e
topology: v6e:2x2x1
jax: 0.10.0
libtpu: 0.0.40
codegen_flags: <defaults>
</compile_context>

<pallas_src>
import jax
import jax.numpy as jnp
from jax.experimental import pallas as pl
from jax.experimental.pallas import tpu as pltpu


def _round_up(x: int, m: int) -> int:
    return (x + m - 1) // m * m


def _cdiv(a: int, b: int) -> int:
    return -(-a // b)


# ---------------------------------------------------------------------------
# Kernels
# ---------------------------------------------------------------------------
def _fused_row_kernel(adj_ref, xw_ref, b_ref, out_ref):
    """Resident-XW path: one (tm, N) row tile of A times the VMEM-resident
    (N, F_pad) XW slab; bias + ReLU fused into the single store."""
    a = adj_ref[...].astype(jnp.bfloat16)        # no-op if already bf16
    acc = jnp.dot(a, xw_ref[...], preferred_element_type=jnp.float32)
    out_ref[...] = jnp.maximum(acc + b_ref[...], 0.0).astype(out_ref.dtype)


def _tiled_k_kernel(adj_ref, xw_ref, b_ref, out_ref):
    """Large-N fallback: K-tiled reduction.  The f32 output block has a
    constant block index across the (last, 'arbitrary') k axis, so it is
    resident in VMEM and used directly as the accumulator."""
    k = pl.program_id(1)

    @pl.when(k == 0)
    def _init():
        out_ref[...] = jnp.zeros_like(out_ref)

    a = adj_ref[...].astype(jnp.bfloat16)        # no-op if already bf16
    out_ref[...] += jnp.dot(a, xw_ref[...], preferred_element_type=jnp.float32)

    @pl.when(k == pl.num_programs(1) - 1)
    def _finalize():
        out_ref[...] = jnp.maximum(out_ref[...] + b_ref[...], 0.0)


# ---------------------------------------------------------------------------
# Wrapper
# ---------------------------------------------------------------------------
def graph_model_forward(x, adj, w, b, *, tm: int = 1024, tk: int = 2048,
                        resident_vmem_budget: int = 20 * 1024 * 1024):
    """Concrete `Model.forward(data, graph)` equivalent.

    x:   [N, F_in]   node features (the `data` Tensor)
    adj: [N, N]      dense adjacency (the `graph`); bf16 or f32
    w:   [F_in, F_out], b: [1, F_out]  parameters
    returns [N, F_out] float32
    """
    n, f_in = x.shape
    f_out = w.shape[1]

    # Hoisted skinny projection (contraction dim = f_in is tiny): plain XLA.
    xw = jnp.dot(x, w, preferred_element_type=jnp.float32)          # [N, F_out]

    # Lane-dense feature padding (full `vst` stores, no masked partials).
    f_pad = _round_up(max(f_out, 128), 128)
    b_p = jnp.pad(b.reshape(1, f_out).astype(jnp.float32),
                  ((0, 0), (0, f_pad - f_out)))

    # Row tiling: tm a multiple of 16, and >= 2 row tiles whenever the graph
    # is big enough, so both v7x TensorCores are used ("parallel" axis).
    r = max(1, _cdiv(n, tm))
    if r == 1 and n > 256:
        r = 2
    tm_eff = _round_up(_cdiv(n, r), 16)
    n_rows_pad = r * tm_eff
    row_pad = n_rows_pad - n

    out_shape = jax.ShapeDtypeStruct((n_rows_pad, f_pad), jnp.float32)

    # --- Path selection (static, shape/dtype only) -------------------------
    a_itemsize = 2 if row_pad else adj.dtype.itemsize
    resident_bytes = (2 * tm_eff * n * a_itemsize        # A row tile x2 buffers
                      + 2 * n * f_pad * 2                # XW slab (bf16)
                      + 2 * tm_eff * f_pad * 4)          # output block x2 buffers

    if resident_bytes <= resident_vmem_budget:
        # ---------------- Resident-XW path (single pass over A) -----------
        xw_bf = jnp.pad(xw, ((0, 0), (0, f_pad - f_out))).astype(jnp.bfloat16)
        if row_pad:
            # Cast fused with the pad -> half the written bytes vs f32 pad.
            adj_in = jnp.pad(adj.astype(jnp.bfloat16), ((0, row_pad), (0, 0)))
        else:
            adj_in = adj   # zero prep passes over the N x N operand

        flops = 2 * n_rows_pad * n * f_pad
        bytes_accessed = (adj_in.size * adj_in.dtype.itemsize   # A once
                          + xw_bf.size * 2                      # XW once
                          + n_rows_pad * f_pad * 4              # output
                          + f_pad * 4)                          # bias

        out_padded = pl.pallas_call(
            _fused_row_kernel,
            out_shape=out_shape,
            grid_spec=pltpu.PrefetchScalarGridSpec(
                num_scalar_prefetch=0,
                grid=(r,),
                in_specs=[
                    pl.BlockSpec((tm_eff, n), lambda i: (i, 0)),    # A row tile
                    pl.BlockSpec((n, f_pad), lambda i: (0, 0)),     # resident XW
                    pl.BlockSpec((1, f_pad), lambda i: (0, 0)),     # resident bias
                ],
                out_specs=pl.BlockSpec((tm_eff, f_pad), lambda i: (i, 0)),
            ),
            compiler_params=pltpu.CompilerParams(
                dimension_semantics=("parallel",),
                vmem_limit_bytes=32 * 1024 * 1024,
            ),
            cost_estimate=pl.CostEstimate(
                flops=flops, transcendentals=0, bytes_accessed=bytes_accessed),
        )(adj_in, xw_bf, b_p)

    else:
        # ---------------- Large-N fallback: 2-D (rows, K) grid ------------
        kt = max(1, _cdiv(n, tk))
        tk_eff = _round_up(_cdiv(n, kt), 128)
        n_cols_pad = kt * tk_eff
        col_pad = n_cols_pad - n

        adj_in = adj.astype(jnp.bfloat16)          # cast BEFORE pad (half writes)
        if row_pad or col_pad:
            adj_in = jnp.pad(adj_in, ((0, row_pad), (0, col_pad)))
        xw_bf = jnp.pad(xw, ((0, col_pad), (0, f_pad - f_out))).astype(jnp.bfloat16)

        flops = 2 * n_rows_pad * n_cols_pad * f_pad
        bytes_accessed = (adj_in.size * 2            # A streamed once
                          + r * xw_bf.size * 2       # XW re-read per row tile
                          + n_rows_pad * f_pad * 4   # output
                          + f_pad * 4)               # bias

        out_padded = pl.pallas_call(
            _tiled_k_kernel,
            out_shape=out_shape,
            grid_spec=pltpu.PrefetchScalarGridSpec(
                num_scalar_prefetch=0,
                grid=(r, kt),
                in_specs=[
                    pl.BlockSpec((tm_eff, tk_eff), lambda i, k: (i, k)),  # A tile
                    pl.BlockSpec((tk_eff, f_pad), lambda i, k: (k, 0)),   # XW slab
                    pl.BlockSpec((1, f_pad), lambda i, k: (0, 0)),        # bias
                ],
                out_specs=pl.BlockSpec((tm_eff, f_pad), lambda i, k: (i, 0)),
            ),
            compiler_params=pltpu.CompilerParams(
                dimension_semantics=("parallel", "arbitrary"),
                vmem_limit_bytes=32 * 1024 * 1024,
            ),
            cost_estimate=pl.CostEstimate(
                flops=flops, transcendentals=0, bytes_accessed=bytes_accessed),
        )(adj_in, xw_bf, b_p)

    return out_padded[:n, :f_out]


# ---------------------------------------------------------------------------
# Self-test
# ---------------------------------------------------------------------------
if __name__ == "__main__":
    # 1024 nodes, 16 input features, 64 output features (padded to 128 lanes
    # internally).  Resident path: grid = (2 row tiles,), XW slab DMA'd once.
    N, F_IN, F_OUT = 1024, 16, 64

    key = jax.random.PRNGKey(0)
    k_x, k_a, k_w, k_b = jax.random.split(key, 4)

    x = jax.random.normal(k_x, (N, F_IN), dtype=jnp.float32)

    # Symmetric dense adjacency with self-loops, row-normalized.
    a = (jax.random.uniform(k_a, (N, N)) > 0.9).astype(jnp.float32)
    a = jnp.maximum(a, a.T) + jnp.eye(N, dtype=jnp.float32)
    adj = a / jnp.sum(a, axis=1, keepdims=True)

    # Deterministically initialized parameters (shapes implied by the forward).
    w = jax.random.normal(k_w, (F_IN, F_OUT), dtype=jnp.float32) * 0.1
    b = jax.random.normal(k_b, (1, F_OUT), dtype=jnp.float32) * 0.01

    # Static graph (typical for GNNs): cast the adjacency to bf16 ONCE outside
    # the per-call forward path, so the kernel streams 2 bytes/element with no
    # per-call prep passes over the N x N operand.
    adj_bf = adj.astype(jnp.bfloat16)

    fwd = jax.jit(graph_model_forward)
    out = fwd(x, adj_bf, w, b)
    jax.block_until_ready(out)

    # Also exercise the large-N fallback path (forced) for coverage.
    out_tiled = graph_model_forward(x, adj_bf, w, b, resident_vmem_budget=0)
    jax.block_until_ready(out_tiled)

    # Reference with identical bf16 operand rounding (f32 accumulation).
    xw_bf = (x @ w).astype(jnp.bfloat16).astype(jnp.float32)
    ref = jnp.maximum(adj_bf.astype(jnp.float32) @ xw_bf + b, 0.0)

    assert out.shape == (N, F_OUT)
    assert jnp.allclose(out, ref, atol=1e-3, rtol=1e-3), (
        float(jnp.max(jnp.abs(out - ref))))
    assert jnp.allclose(out_tiled, ref, atol=1e-3, rtol=1e-3), (
        float(jnp.max(jnp.abs(out_tiled - ref))))

    print("KERNEL_OK")
</pallas_src>

<mosaic_0001>
module attributes {stable_mosaic.version = 11 : i64} {
  func.func @_fused_row_kernel(%arg0: i32, %arg1: memref<512x1024xbf16, #tpu.memory_space<vmem>>, %arg2: memref<1024x128xbf16, #tpu.memory_space<vmem>>, %arg3: memref<1x128xf32, #tpu.memory_space<vmem>>, %arg4: memref<512x128xf32, #tpu.memory_space<vmem>>) attributes {dimension_semantics = [#tpu.dimension_semantics<parallel>], iteration_bounds = array<i64: 2>, scalar_prefetch = 0 : i64, scratch_operands = 0 : i64, tpu.core_type = #tpu.core_type<tc>, window_params = [{transform_indices = @transform_0, window_bounds = array<i64: 512, 1024>}, {pipeline_mode = #tpu.pipeline_mode<synchronous>, transform_indices = @transform_1, window_bounds = array<i64: 1024, 128>}, {pipeline_mode = #tpu.pipeline_mode<synchronous>, transform_indices = @transform_2, window_bounds = array<i64: 1, 128>}, {transform_indices = @transform_3, window_bounds = array<i64: 512, 128>}]} {
    %c0 = arith.constant 0 : index
    %c0_0 = arith.constant 0 : index
    %0 = vector.load %arg1[%c0, %c0_0] : memref<512x1024xbf16, #tpu.memory_space<vmem>>, vector<512x1024xbf16>
    %c0_1 = arith.constant 0 : index
    %c0_2 = arith.constant 0 : index
    %1 = vector.load %arg2[%c0_1, %c0_2] : memref<1024x128xbf16, #tpu.memory_space<vmem>>, vector<1024x128xbf16>
    %cst = arith.constant dense<0.000000e+00> : vector<512x128xf32>
    %2 = tpu.matmul %0, %1, %cst {dimension_numbers = #tpu.dot_dimension_numbers<[1], [0], [0], [1], [0, 0, 1, 1], [], []>} : vector<512x1024xbf16>, vector<1024x128xbf16>, vector<512x128xf32> -> vector<512x128xf32>
    %c0_3 = arith.constant 0 : index
    %c0_4 = arith.constant 0 : index
    %3 = vector.load %arg3[%c0_3, %c0_4] : memref<1x128xf32, #tpu.memory_space<vmem>>, vector<1x128xf32>
    %4 = vector.broadcast %3 : vector<1x128xf32> to vector<512x128xf32>
    %5 = arith.addf %2, %4 : vector<512x128xf32>
    %cst_5 = arith.constant 0.000000e+00 : f32
    %6 = vector.broadcast %cst_5 : f32 to vector<512x128xf32>
    %7 = arith.maximumf %5, %6 : vector<512x128xf32>
    %c0_6 = arith.constant 0 : index
    %c0_7 = arith.constant 0 : index
    %8 = vector.load %arg4[%c0_6, %c0_7] : memref<512x128xf32, #tpu.memory_space<vmem>>, vector<512x128xf32>
    tpu.vector_store %arg4[%c0_6, %c0_7], %7 {strides = array<i32>} : memref<512x128xf32, #tpu.memory_space<vmem>>, vector<512x128xf32>,
    return
  }
  func.func @transform_0(%arg0: i32) -> (i32, i32) {
    %c0_i32 = arith.constant 0 : i32
    %c0_i32_0 = arith.constant 0 : i32
    return %arg0, %c0_i32 : i32, i32
  }
  func.func @transform_1(%arg0: i32) -> (i32, i32) {
    %c0_i32 = arith.constant 0 : i32
    %c0_i32_0 = arith.constant 0 : i32
    %c0_i32_1 = arith.constant 0 : i32
    return %c0_i32, %c0_i32_0 : i32, i32
  }
  func.func @transform_2(%arg0: i32) -> (i32, i32) {
    %c0_i32 = arith.constant 0 : i32
    %c0_i32_0 = arith.constant 0 : i32
    %c0_i32_1 = arith.constant 0 : i32
    return %c0_i32, %c0_i32_0 : i32, i32
  }
  func.func @transform_3(%arg0: i32) -> (i32, i32) {
    %c0_i32 = arith.constant 0 : i32
    %c0_i32_0 = arith.constant 0 : i32
    return %arg0, %c0_i32 : i32, i32
  }
}

</mosaic_0001>

<bundles_post_ra>
// kernel: graph_model_forward.1
= control target key start
LH: loop header
LB: loop body
LE: loop exit
PB: predicated region body
PF: predicated region fallthrough
CT: control target
= control target key end

     0   :  { %8 = vsyncpa [#allocation3], 0  ;;  %s5096_s0 = inlined_call_operand.hbm [shape: bf16[1024,1024], index: 0, kind: input, shape index: {}]   ;;  %s5097_s1 = inlined_call_operand.vmem [shape: bf16[1024,128], index: 1, kind: input, shape index: {}]   ;;  %s5098_s2 = inlined_call_operand.vmem [shape: f32[1,128], index: 2, kind: input, shape index: {}]   ;;  %s5099_s3 = inlined_call_operand.vmem [shape: f32[1024,128], index: 3, kind: output, shape index: {}]  }
   0x1   :  { %10 = vsyncpa [#allocation3 + $0x1], 0  ;;  %s4133_s12 = smov 0   ;;  %s4135_s13 = smov 0  }
   0x2   :  { %s4137_s14 = smov 0   ;;  %s4139_s15 = smov 0  }
   0x3 LB: > { %s3601_s16 = sadd.s32 4294967295, %s4107_s15   ;;  %s4153_s17 = sadd.s32 1, %s4107_s15   ;;  %s4107_s15 = sphi %s4139_s15, %s5150_s15   ;;  %s4103_s14 = sphi %s4137_s14, %s5149_s14   ;;  %s4099_s13 = sphi %s4135_s13, %s5148_s13   ;;  %s4095_s12 = sphi %s4133_s12, %s5147_s12  }
   0x4   : > { %s20_s18 = ssub.s32 %s4107_s15, %s4153_s17  ;;  %s23_s19 = sadd.s32 1, %s4103_s14 }
   0x5   : > { %p21_p0 = scmp.eq.s32.totalorder %s20_s18, 0  ;;  %p30_p1 = scmp.ne.s32.totalorder %s4103_s14, %s4099_s13 }
   0x6   : > { %p31_p2 = scmp.eq.s32.totalorder %s4107_s15, 0  ;;  %p36_p3 = scmp.ne.s32.totalorder %s4099_s13, %s4095_s12 }
   0x7   : > { %s4163_s20 = scalar_select %p21_p0, %s4103_s14, %s23_s19  }
   0x8   : > { %p32_p4 = por %p31_p2, %p30_p1  ;;  %p37_p5 = scmp.eq.s32.totalorder %s3601_s16, 0 }
   0x9   : > { %p3944_p6 = scmp.lt.s32.totalorder %s4107_s15, 2  ;;  %s134_s22 = sand.u32 1, %s4103_s14  }
   0xa   : > { %p4168_p7 = por %p37_p5, %p36_p3  ;;  %s3605_s23 = sshll.u32 %s134_s22, 11 }
   0xb   : > { %s3937_s24 = sshll.u32 %s4107_s15, 15  ;;  %s138_s28 = scalar_lea.vmem [#allocation2], %s3605_s23 }
   0xc   : > { %s5101_s21 = scalar_select %p4168_p7, 1, 0 }
   0xd   : > { %s4177_s27 = scalar_lea.hbm %s5096_s0, %s3937_s24  ;;  %s146_s29 = sshll.u32 %s138_s28, 4  ;;  %s4179_s29 = int_to_ptr.vmem [resolvable:$true] %s146_s29 }
   0xe   : > { %p4181_p8 = pnand %p3944_p6, %p32_p4  ;;  %s4186_s4 = scalar_lea.sflag [#allocation3], %s134_s22 }
   0xf   : > { %s4045_s5 = scalar_lea.hbm %s4177_s27, 32768  ;;  %s4050_s8 = scalar_lea.hbm %s5096_s0, 65536 }
  0x10   : > { %p4046_p10 = scmp.ne.s32.totalorder %s4177_s27, %s4045_s5  ;;  %p4047_p11 = pneg %p4181_p8 }
  0x11   : > { %p4051_p0 = scmp.lt.s32.totalorder %s4177_s27, %s5096_s0  ;;  %p4052_p1 = scmp.lt.s32.totalorder %s4050_s8, %s4045_s5 }
  0x12   : > { %p4048_p12 = pnand %p4047_p11, %p4046_p10 }
  0x13   : > { %p4053_p2 = por %p4052_p1, %p4051_p0 }
  0x14   : > { %p4049_p13 = pneg %p4048_p12 }
  0x16   : > { %p4054_p3 = pnand %p4053_p2, %p4049_p13 }
  0x18   : > { %4057 = shalt.err (!%p4054_p3)
}
  0x19   : > { %s4058_s11 = scalar_lea.vmem %s4179_s29, 32768  ;;  %s4109_s12 = smov [#allocation2]  }
  0x1a   : > { %p4059_p4 = scmp.ne.s32.totalorder %s4179_s29, %s4058_s11  ;;  %s4063_s18 = sshll.u32 %s4109_s12, 4  ;;  %s4064_s18 = int_to_ptr.vmem [resolvable:$false] %s4063_s18 }
  0x1b   : > { %s4065_s19 = scalar_lea.vmem %s4064_s18, 65536  ;;  %p4066_p10 = scmp.lt.s32.totalorder %s4179_s29, %s4064_s18 }
  0x1c   : > { %p4061_p5 = pnand %p4059_p4, %p4047_p11  ;;  %p4067_p12 = scmp.lt.s32.totalorder %s4065_s19, %s4058_s11 }
  0x1e   : > { %p4062_p6 = pneg %p4061_p5  ;;  %p4068_p9 = por %p4067_p12, %p4066_p10 }
  0x20   : > { %p4069_p7 = pnand %p4068_p9, %p4062_p6 }
  0x22   : > { %4072 = shalt.err (!%p4069_p7)
}
  0x23   : > { %s4110_s22 = smov 512   ;;  %s4111_s23 = smov 32  }
  0x24   : > { %3943 = dma.hbm_to_vmem [thread:$0]  (!%p4181_p8), %s4177_s27, 32768, %s4179_s29, %s4186_s4, %s4110_s22, %s4110_s22, %s4111_s23  }
  0x25   : > { %p154_p11 = scmp.lt.s32.totalorder %s4107_s15, 3  ;;  %p5103_p13 = scmp.ge.s32.totalorder %s4107_s15, 1 }
  0x27   : > { %p155_p0 = pnand %p5103_p13, %p154_p11 }
  0x29   : > { %158 = sbr.rel (%p155_p0) target bundleno = 823 (0x337), region = 32 }
  0x2e   : > { %s160_s24 = sand.u32 1, %s4099_s13   ;;  %p5104_p7 = scmp.ne.s32.totalorder %s5101_s21, 0 }
  0x2f   : > { %s3610_s25 = sshll.u32 %s160_s24, 11  ;;  %s161_s26 = scalar_lea.sflag [#allocation3], %s160_s24 }
  0x30   : > { %s4211_s28 = scalar_lea.vmem [#allocation2], %s3610_s25 }
  0x31   : > { %4090 = dma.done.wait (%p5104_p7), %s161_s26, 32768  }
  0x32   : > { %4092 = vsyncadd (%p5104_p7), %s161_s26, 4294934528  ;;  %v4112_v0 = vmov 0   ;;  %v3980_v1 = vld [vmem:[%s5097_s1 + $0x38] sm:$0xff]   ;;  %v3982_v3 = vld [vmem:[%s5097_s1 + $0x30] sm:$0xff]   ;;  %s3611_s12 = sshll.u32 %s3601_s16, 6 }
  0x33   : > { %2250 = vmatprep.subr.bf16.mxu0 %v4112_v0  ;;  %2539 = vmatprep.subr.bf16.mxu1 %v4112_v0  ;;  %v3981_v2 = vld [vmem:[%s5097_s1 + $0xb8] sm:$0xff]   ;;  %v3983_v4 = vld [vmem:[%s5097_s1 + $0xb0] sm:$0xff]   ;;  %v3984_v5 = vld [vmem:[%s5097_s1 + $0x28] sm:$0xff]   ;;  %p189_p8 = scmp.lt.s32.totalorder %s3611_s12, 127 }
  0x34   : > { %2251 = vmatpush1.bf16.msra.mxu0 %v3980_v1  ;;  %2540 = vmatpush1.bf16.msra.mxu1 %v3981_v2  ;;  %v3985_v6 = vld [vmem:[%s5097_s1 + $0xa8] sm:$0xff]   ;;  %v3986_v7 = vld [vmem:[%s5097_s1 + $0x20] sm:$0xff]   ;;  %v3988_v9 = vld [vmem:[%s5097_s1 + $0x18] sm:$0xff]  }
  0x35   : > { %2252 = vmatprep.subr.bf16.mxu0 %v4112_v0  ;;  %2541 = vmatprep.subr.bf16.mxu1 %v4112_v0  ;;  %v3987_v8 = vld [vmem:[%s5097_s1 + $0xa0] sm:$0xff]   ;;  %v3989_v10 = vld [vmem:[%s5097_s1 + $0x98] sm:$0xff]   ;;  %v3990_v11 = vld [vmem:[%s5097_s1 + $0x10] sm:$0xff]   ;;  %s5152_s12 = smov (!%p189_p8, %s3611_s12), 127 }
  0x36   : > { %v3991_v12 = vld [vmem:[%s5097_s1 + $0x90] sm:$0xff]   ;;  %v3992_v13 = vld [vmem:[%s5097_s1 + $0x8] sm:$0xff]   ;;  %v3994_v15 = vld [vmem:[%s5097_s1] sm:$0xff]   ;;  %s3612_s15 = sshll.u32 %s5152_s12, 3 }
  0x37   : > { %v3993_v14 = vld [vmem:[%s5097_s1 + $0x88] sm:$0xff]   ;;  %v3995_v16 = vld [vmem:[%s5097_s1 + $0x80] sm:$0xff]   ;;  %v3996_v17 = vld [vmem:[%s5097_s1 + $0x78] sm:$0xff]   ;;  %s4934_s19 = scalar_lea.vmem %s5099_s3, %s3612_s15 }
  0x38   : > { %2253 = vmatpush1.bf16.msra.mxu0 %v3982_v3  ;;  %2542 = vmatpush1.bf16.msra.mxu1 %v3983_v4  ;;  %v3997_v18 = vld [vmem:[%s5097_s1 + $0xf8] sm:$0xff]   ;;  %v4290_v19 = vld [vmem:[%s4211_s28] sm:$0xff]  ;;  %v4296_v21 = vld [vmem:[%s4211_s28 + $0x8] sm:$0xff] }
  0x39   : > { %2254 = vmatprep.subr.bf16.mxu0 %v4112_v0  ;;  %2543 = vmatprep.subr.bf16.mxu1 %v4112_v0  ;;  %v4293_v20 = vld [vmem:[%s4211_s28 + $0x20] sm:$0xff]  ;;  %v4301_v23 = vld [vmem:[%s4211_s28 + $0x28] sm:$0xff]  ;;  %v3998_v24 = vld [vmem:[%s5097_s1 + $0x70] sm:$0xff]  }
  0x3a   : > { %v3615_v22 = vcombine.high %v4290_v19, %v4293_v20  ;;  %v3617_v25 = vcombine.high %v4296_v21, %v4301_v23  ;;  %v3999_v26 = vld [vmem:[%s5097_s1 + $0xf0] sm:$0xff]   ;;  %v4000_v27 = vld [vmem:[%s5097_s1 + $0x68] sm:$0xff]   ;;  %v4002_v29 = vld [vmem:[%s5097_s1 + $0x60] sm:$0xff]   ;;  %v3614_v42 = vcombine.low %v4290_v19, %v4293_v20  ;;  %v3616_v44 = vcombine.low %v4296_v21, %v4301_v23 }
  0x3b   : > { %v4001_v28 = vld [vmem:[%s5097_s1 + $0xe8] sm:$0xff]   ;;  %v4003_v30 = vld [vmem:[%s5097_s1 + $0xe0] sm:$0xff]   ;;  %v4004_v31 = vld [vmem:[%s5097_s1 + $0x58] sm:$0xff]  }
  0x3c   : > { %2255 = vmatpush1.bf16.msra.mxu0 %v3984_v5  ;;  %2544 = vmatpush1.bf16.msra.mxu1 %v3985_v6  ;;  %v4005_v32 = vld [vmem:[%s5097_s1 + $0xd8] sm:$0xff]   ;;  %v4006_v33 = vld [vmem:[%s5097_s1 + $0x50] sm:$0xff]   ;;  %v4008_v35 = vld [vmem:[%s5097_s1 + $0x48] sm:$0xff]  }
  0x3d   : > { %2256 = vmatprep.subr.bf16.mxu0 %v4112_v0  ;;  %2545 = vmatprep.subr.bf16.mxu1 %v4112_v0  ;;  %v4007_v34 = vld [vmem:[%s5097_s1 + $0xd0] sm:$0xff]   ;;  %v4009_v36 = vld [vmem:[%s5097_s1 + $0xc8] sm:$0xff]   ;;  %v4010_v37 = vld [vmem:[%s5097_s1 + $0x40] sm:$0xff]  }
  0x3e   : > { %2282 = vmatprep.mubr.bf16.mxu0 %v3615_v22  ;;  %2571 = vmatprep.mubr.bf16.mxu1 %v3617_v25  ;;  %v4011_v38 = vld [vmem:[%s5097_s1 + $0xc0] sm:$0xff]   ;;  %v204_v41 = vld [vmem:[%s4211_s28 + $0x48] sm:$0xff]  ;;  %v4012_v45 = vld [vmem:[%s5097_s1 + $0x138] sm:$0xff]  }
  0x3f   : > { %v203_v39 = vld [vmem:[%s4211_s28 + $0x40] sm:$0xff]  ;;  %v208_v43 = vld [vmem:[%s4211_s28 + $0x68] sm:$0xff]  ;;  %v4013_v46 = vld [vmem:[%s5097_s1 + $0x1b8] sm:$0xff]  }
  0x40   : > { %2257 = vmatpush1.bf16.msra.mxu0 %v3986_v7  ;;  %2546 = vmatpush1.bf16.msra.mxu1 %v3987_v8  ;;  %v207_v40 = vld [vmem:[%s4211_s28 + $0x60] sm:$0xff]  ;;  %v3625_v48 = vcombine.high %v204_v41, %v208_v43  ;;  %v4014_v51 = vld [vmem:[%s5097_s1 + $0x130] sm:$0xff]   ;;  %v212_v53 = vld [vmem:[%s4211_s28 + $0x88] sm:$0xff]  ;;  %v3624_v56 = vcombine.low %v204_v41, %v208_v43 }
  0x41   : > { %2258 = vmatprep.subr.bf16.mxu0 %v4112_v0  ;;  %2547 = vmatprep.subr.bf16.mxu1 %v4112_v0  ;;  %v3623_v47 = vcombine.high %v203_v39, %v207_v40  ;;  %v211_v49 = vld [vmem:[%s4211_s28 + $0x80] sm:$0xff]  ;;  %v4015_v52 = vld [vmem:[%s5097_s1 + $0x1b0] sm:$0xff]   ;;  %v216_v54 = vld [vmem:[%s4211_s28 + $0xa8] sm:$0xff]  ;;  %v3622_v55 = vcombine.low %v203_v39, %v207_v40 }
  0x42   : > { %v215_v50 = vld [vmem:[%s4211_s28 + $0xa0] sm:$0xff]  ;;  %v3633_v58 = vcombine.high %v212_v53, %v216_v54  ;;  %v4016_v59 = vld [vmem:[%s5097_s1 + $0x128] sm:$0xff]   ;;  %v4020_v5 = vld [vmem:[%s5097_s1 + $0x118] sm:$0xff]   ;;  %v3632_v6 = vcombine.low %v212_v53, %v216_v54 }
  0x43   : > { %v3631_v57 = vcombine.high %v211_v49, %v215_v50  ;;  %v4017_v60 = vld [vmem:[%s5097_s1 + $0x1a8] sm:$0xff]   ;;  %v219_v61 = vld [vmem:[%s4211_s28 + $0xc0] sm:$0xff]  ;;  %v3630_v4 = vcombine.low %v211_v49, %v215_v50  ;;  %v4021_v8 = vld [vmem:[%s5097_s1 + $0x198] sm:$0xff]  }
  0x44   : > { %2259 = vmatpush1.bf16.msra.mxu0 %v3988_v9  ;;  %2548 = vmatpush1.bf16.msra.mxu1 %v3989_v10  ;;  %v223_v62 = vld [vmem:[%s4211_s28 + $0xe0] sm:$0xff]  ;;  %v220_v63 = vld [vmem:[%s4211_s28 + $0xc8] sm:$0xff]  ;;  %v4031_v39 = vld [vmem:[%s5097_s1 + $0x1f0] sm:$0xff]  }
  0x45   : > { %2260 = vmatprep.subr.bf16.mxu0 %v4112_v0  ;;  %2549 = vmatprep.subr.bf16.mxu1 %v4112_v0  ;;  %v224_v1 = vld [vmem:[%s4211_s28 + $0xe8] sm:$0xff]  ;;  %v4018_v2 = vld [vmem:[%s5097_s1 + $0x120] sm:$0xff]   ;;  %v3639_v7 = vcombine.high %v219_v61, %v223_v62 }
  0x46   : > { %v4019_v3 = vld [vmem:[%s5097_s1 + $0x1a0] sm:$0xff]   ;;  %v3641_v9 = vcombine.high %v220_v63, %v224_v1  ;;  %v4024_v20 = vld [vmem:[%s5097_s1 + $0x108] sm:$0xff]  }
  0x47   : > { %v227_v10 = vld [vmem:[%s4211_s28 + $0x100] sm:$0xff]  ;;  %v4025_v21 = vld [vmem:[%s5097_s1 + $0x188] sm:$0xff]  }
  0x48   : > { %2261 = vmatpush1.bf16.msra.mxu0 %v3990_v11  ;;  %2550 = vmatpush1.bf16.msra.mxu1 %v3991_v12  ;;  %v231_v11 = vld [vmem:[%s4211_s28 + $0x120] sm:$0xff]  ;;  %v228_v12 = vld [vmem:[%s4211_s28 + $0x108] sm:$0xff] }
  0x49   : > { %2262 = vmatprep.subr.bf16.mxu0 %v4112_v0  ;;  %2551 = vmatprep.subr.bf16.mxu1 %v4112_v0  ;;  %v235_v22 = vld [vmem:[%s4211_s28 + $0x140] sm:$0xff]  ;;  %v236_v25 = vld [vmem:[%s4211_s28 + $0x148] sm:$0xff] }
  0x4a   : > { %v239_v23 = vld [vmem:[%s4211_s28 + $0x160] sm:$0xff]  ;;  %v256_v49 = vld [vmem:[%s4211_s28 + $0x1e8] sm:$0xff] }
  0x4b   : > { %v3654_v40 = vcombine.low %v235_v22, %v239_v23  ;;  %v4034_v54 = vld [vmem:[%s5097_s1 + $0x160] sm:$0xff]  }
  0x4c   : > { %2263 = vmatpush1.bf16.msra.mxu0 %v3992_v13  ;;  %2552 = vmatpush1.bf16.msra.mxu1 %v3993_v14  ;;  %v232_v13 = vld [vmem:[%s4211_s28 + $0x128] sm:$0xff]  ;;  %v4022_v14 = vld [vmem:[%s5097_s1 + $0x110] sm:$0xff]  }
  0x4d   : > { %2264 = vmatprep.subr.bf16.mxu0 %v4112_v0  ;;  %2553 = vmatprep.subr.bf16.mxu1 %v4112_v0  ;;  %v3649_v19 = vcombine.high %v228_v12, %v232_v13 }
  0x50   : > { %2265 = vmatpush1.bf16.msra.mxu0 %v3994_v15  ;;  %2554 = vmatpush1.bf16.msra.mxu1 %v3995_v16  ;;  %v4023_v15 = vld [vmem:[%s5097_s1 + $0x190] sm:$0xff]   ;;  %v3638_v16 = vcombine.low %v219_v61, %v223_v62 }
  0x51   : > { %2266 = vmatprep.subr.bf16.mxu0 %v4112_v0  ;;  %2555 = vmatprep.subr.bf16.mxu1 %v4112_v0 }
  0x54   : > { %2267 = vmatpush2.bf16.msra.mxu0 %v3996_v17  ;;  %2556 = vmatpush2.bf16.msra.mxu1 %v3997_v18  ;;  %v3640_v17 = vcombine.low %v220_v63, %v224_v1  ;;  %v3647_v18 = vcombine.high %v227_v10, %v231_v11  ;;  %v267_v1 = vld [vmem:[%s4211_s28 + $0x240] sm:$0xff] }
  0x55   : > { %2268 = vmatprep.subr.bf16.mxu0 %v4112_v0  ;;  %2557 = vmatprep.subr.bf16.mxu1 %v4112_v0 }
  0x58   : > { %2269 = vmatpush2.bf16.msra.mxu0 %v3998_v24  ;;  %2558 = vmatpush2.bf16.msra.mxu1 %v3999_v26  ;;  %v4026_v24 = vld [vmem:[%s5097_s1 + $0x100] sm:$0xff]   ;;  %v240_v26 = vld [vmem:[%s4211_s28 + $0x168] sm:$0xff] }
  0x59   : > { %2270 = vmatprep.subr.bf16.mxu0 %v4112_v0  ;;  %2559 = vmatprep.subr.bf16.mxu1 %v4112_v0  ;;  %v3656_v41 = vcombine.low %v236_v25, %v240_v26 }
  0x5c   : > { %2271 = vmatpush2.bf16.msra.mxu0 %v4000_v27  ;;  %2560 = vmatpush2.bf16.msra.mxu1 %v4001_v28  ;;  %v4027_v27 = vld [vmem:[%s5097_s1 + $0x180] sm:$0xff]   ;;  %v3646_v28 = vcombine.low %v227_v10, %v231_v11  ;;  %v276_v11 = vld [vmem:[%s4211_s28 + $0x288] sm:$0xff] }
  0x5d   : > { %2272 = vmatprep.subr.bf16.mxu0 %v4112_v0  ;;  %2561 = vmatprep.subr.bf16.mxu1 %v4112_v0  ;;  %v279_v10 = vld [vmem:[%s4211_s28 + $0x2a0] sm:$0xff] }
  0x60   : > { %2273 = vmatpush2.bf16.msra.mxu0 %v4002_v29  ;;  %2562 = vmatpush2.bf16.msra.mxu1 %v4003_v30  ;;  %v3648_v29 = vcombine.low %v228_v12, %v232_v13  ;;  %v3655_v30 = vcombine.high %v235_v22, %v239_v23  ;;  %v280_v12 = vld [vmem:[%s4211_s28 + $0x2a8] sm:$0xff]  ;;  %v4036_v13 = vld [vmem:[%s5097_s1 + $0x158] sm:$0xff]  }
  0x61   : > { %2274 = vmatprep.subr.bf16.mxu0 %v4112_v0  ;;  %2563 = vmatprep.subr.bf16.mxu1 %v4112_v0  ;;  %v288_v22 = vld [vmem:[%s4211_s28 + $0x2e8] sm:$0xff] }
  0x64   : > { %2275 = vmatpush2.bf16.msra.mxu0 %v4004_v31  ;;  %2564 = vmatpush2.bf16.msra.mxu1 %v4005_v32  ;;  %v3657_v31 = vcombine.high %v236_v25, %v240_v26  ;;  %v4028_v32 = vld [vmem:[%s5097_s1 + $0x178] sm:$0xff]  }
  0x65   : > { %2276 = vmatprep.subr.bf16.mxu0 %v4112_v0  ;;  %2565 = vmatprep.subr.bf16.mxu1 %v4112_v0 }
  0x68   : > { %2277 = vmatpush2.bf16.msra.mxu0 %v4006_v33  ;;  %2566 = vmatpush2.bf16.msra.mxu1 %v4007_v34  ;;  %v4029_v33 = vld [vmem:[%s5097_s1 + $0x1f8] sm:$0xff]   ;;  %v243_v34 = vld [vmem:[%s4211_s28 + $0x180] sm:$0xff] }
  0x69   : > { %2278 = vmatprep.subr.bf16.mxu0 %v4112_v0  ;;  %2567 = vmatprep.subr.bf16.mxu1 %v4112_v0 }
  0x6c   : > { %2279 = vmatpush2.bf16.msra.mxu0 %v4008_v35  ;;  %2568 = vmatpush2.bf16.msra.mxu1 %v4009_v36  ;;  %v247_v35 = vld [vmem:[%s4211_s28 + $0x1a0] sm:$0xff]  ;;  %v4030_v36 = vld [vmem:[%s5097_s1 + $0x170] sm:$0xff]  }
  0x6d   : > { %2280 = vmatprep.subr.bf16.mxu0 %v4112_v0  ;;  %2569 = vmatprep.subr.bf16.mxu1 %v4112_v0  ;;  %v3662_v50 = vcombine.low %v243_v34, %v247_v35 }
  0x70   : > { %2281 = vmatpush2.bf16.msra.mxu0 %v4010_v37  ;;  %2570 = vmatpush2.bf16.msra.mxu1 %v4011_v38  ;;  %v244_v37 = vld [vmem:[%s4211_s28 + $0x188] sm:$0xff] }
  0x71   : > { %2828 = vmatprep.subr.bf16.mxu0 %v4112_v0  ;;  %3117 = vmatprep.subr.bf16.mxu1 %v4112_v0  ;;  %v248_v38 = vld [vmem:[%s4211_s28 + $0x1a8] sm:$0xff] }
  0x72   : > { %v3665_v43 = vcombine.high %v244_v37, %v248_v38 }
  0x73   : > { %2283 = vmatmul.mubr.bf16.vlgmr.msra.gmra.mxu0 %v3614_v42  ;;  %2572 = vmatmul.mubr.bf16.vlgmr.msra.gmra.mxu1 %v3616_v44  ;;  %v3663_v42 = vcombine.high %v243_v34, %v247_v35  ;;  %v4032_v44 = vld [vmem:[%s5097_s1 + $0x168] sm:$0xff]  }
  0x74   : > { %2829 = vmatpush1.bf16.msra.mxu0 %v4012_v45  ;;  %3118 = vmatpush1.bf16.msra.mxu1 %v4013_v46  ;;  %v4033_v45 = vld [vmem:[%s5097_s1 + $0x1e8] sm:$0xff]   ;;  %v251_v46 = vld [vmem:[%s4211_s28 + $0x1c0] sm:$0xff] }
  0x75   : > { %2290 = vmatprep.mubr.bf16.mxu0 %v3623_v47  ;;  %2579 = vmatprep.mubr.bf16.mxu1 %v3625_v48  ;;  %v255_v47 = vld [vmem:[%s4211_s28 + $0x1e0] sm:$0xff]  ;;  %v252_v48 = vld [vmem:[%s4211_s28 + $0x1c8] sm:$0xff] }
  0x76   : > { %2830 = vmatprep.subr.bf16.mxu0 %v4112_v0  ;;  %3119 = vmatprep.subr.bf16.mxu1 %v4112_v0  ;;  %v3673_v53 = vcombine.high %v252_v48, %v256_v49  ;;  %v3672_v61 = vcombine.low %v252_v48, %v256_v49  ;;  %v312_v48 = vld [vmem:[%s4211_s28 + $0x3a8] sm:$0xff] }
  0x77   : > { %v4040_v49 = vld [vmem:[%s5097_s1 + $0x148] sm:$0xff]  }
  0x78   : > { %2831 = vmatpush1.bf16.msra.mxu0 %v4014_v51  ;;  %3120 = vmatpush1.bf16.msra.mxu1 %v4015_v52  ;;  %v3664_v51 = vcombine.low %v244_v37, %v248_v38  ;;  %v3671_v52 = vcombine.high %v251_v46, %v255_v47  ;;  %v299_v37 = vld [vmem:[%s4211_s28 + $0x340] sm:$0xff] }
  0x79   : > { %2832 = vmatprep.subr.bf16.mxu0 %v4112_v0  ;;  %3121 = vmatprep.subr.bf16.mxu1 %v4112_v0  ;;  %v303_v38 = vld [vmem:[%s4211_s28 + $0x360] sm:$0xff] }
  0x7b   : > { %2291 = vmatmul.mubr.bf16.gmra.mxu0 %v3622_v55  ;;  %2580 = vmatmul.mubr.bf16.gmra.mxu1 %v3624_v56  ;;  %v4035_v55 = vld [vmem:[%s5097_s1 + $0x1e0] sm:$0xff]  }
  0x7c   : > { %2298 = vmatprep.mubr.bf16.mxu0 %v3631_v57  ;;  %2587 = vmatprep.mubr.bf16.mxu1 %v3633_v58  ;;  %v259_v56 = vld [vmem:[%s4211_s28 + $0x200] sm:$0xff]  ;;  %v260_v58 = vld [vmem:[%s4211_s28 + $0x208] sm:$0xff] }
  0x7d   : > { %2833 = vmatpush1.bf16.msra.mxu0 %v4016_v59  ;;  %3122 = vmatpush1.bf16.msra.mxu1 %v4017_v60  ;;  %v263_v57 = vld [vmem:[%s4211_s28 + $0x220] sm:$0xff]  ;;  %v264_v59 = vld [vmem:[%s4211_s28 + $0x228] sm:$0xff]  ;;  %v3670_v60 = vcombine.low %v251_v46, %v255_v47 }
  0x7e   : > { %2834 = vmatprep.subr.bf16.mxu0 %v4112_v0  ;;  %3123 = vmatprep.subr.bf16.mxu1 %v4112_v0  ;;  %v3679_v62 = vcombine.high %v259_v56, %v263_v57  ;;  %v3681_v63 = vcombine.high %v260_v58, %v264_v59  ;;  %v311_v46 = vld [vmem:[%s4211_s28 + $0x3a0] sm:$0xff]  ;;  %v308_v47 = vld [vmem:[%s4211_s28 + $0x388] sm:$0xff] }
  0x81   : > { %2835 = vmatpush1.bf16.msra.mxu0 %v4018_v2  ;;  %3124 = vmatpush1.bf16.msra.mxu1 %v4019_v3  ;;  %v271_v2 = vld [vmem:[%s4211_s28 + $0x260] sm:$0xff]  ;;  %v268_v3 = vld [vmem:[%s4211_s28 + $0x248] sm:$0xff] }
  0x82   : > { %2836 = vmatprep.subr.bf16.mxu0 %v4112_v0  ;;  %3125 = vmatprep.subr.bf16.mxu1 %v4112_v0 }
  0x83   : > { %2299 = vmatmul.mubr.bf16.gmra.mxu0 %v3630_v4  ;;  %2588 = vmatmul.mubr.bf16.gmra.mxu1 %v3632_v6  ;;  %v272_v4 = vld [vmem:[%s4211_s28 + $0x268] sm:$0xff]  ;;  %v3680_v6 = vcombine.low %v260_v58, %v264_v59 }
  0x84   : > { %2306 = vmatprep.mubr.bf16.mxu0 %v3639_v7  ;;  %2595 = vmatprep.mubr.bf16.mxu1 %v3641_v9  ;;  %v3687_v7 = vcombine.high %v267_v1, %v271_v2  ;;  %v275_v9 = vld [vmem:[%s4211_s28 + $0x280] sm:$0xff]  ;;  %v320_v58 = vld [vmem:[%s4211_s28 + $0x3e8] sm:$0xff] }
  0x85   : > { %2837 = vmatpush1.bf16.msra.mxu0 %v4020_v5  ;;  %3126 = vmatpush1.bf16.msra.mxu1 %v4021_v8  ;;  %v3678_v5 = vcombine.low %v259_v56, %v263_v57  ;;  %v3689_v8 = vcombine.high %v268_v3, %v272_v4  ;;  %v3694_v23 = vcombine.low %v275_v9, %v279_v10  ;;  %v319_v56 = vld [vmem:[%s4211_s28 + $0x3e0] sm:$0xff]  ;;  %v316_v57 = vld [vmem:[%s4211_s28 + $0x3c8] sm:$0xff] }
  0x86   : > { %2838 = vmatprep.subr.bf16.mxu0 %v4112_v0  ;;  %3127 = vmatprep.subr.bf16.mxu1 %v4112_v0 }
  0x89   : > { %2839 = vmatpush1.bf16.msra.mxu0 %v4022_v14  ;;  %3128 = vmatpush1.bf16.msra.mxu1 %v4023_v15  ;;  %v4037_v14 = vld [vmem:[%s5097_s1 + $0x1d8] sm:$0xff]   ;;  %v3686_v15 = vcombine.low %v267_v1, %v271_v2  ;;  %v324_v1 = vld [vmem:[%s4211_s28 + $0x408] sm:$0xff] }
  0x8a   : > { %2840 = vmatprep.subr.bf16.mxu0 %v4112_v0  ;;  %3129 = vmatprep.subr.bf16.mxu1 %v4112_v0  ;;  %v328_v2 = vld [vmem:[%s4211_s28 + $0x428] sm:$0xff] }
  0x8b   : > { %2307 = vmatmul.mubr.bf16.gmra.mxu0 %v3638_v16  ;;  %2596 = vmatmul.mubr.bf16.gmra.mxu1 %v3640_v17  ;;  %v3688_v16 = vcombine.low %v268_v3, %v272_v4  ;;  %v3695_v17 = vcombine.high %v275_v9, %v279_v10  ;;  %v4042_v3 = vld [vmem:[%s5097_s1 + $0x140] sm:$0xff]  }
  0x8c   : > { %2314 = vmatprep.mubr.bf16.mxu0 %v3647_v18  ;;  %2603 = vmatprep.mubr.bf16.mxu1 %v3649_v19  ;;  %v3697_v18 = vcombine.high %v276_v11, %v280_v12  ;;  %v283_v19 = vld [vmem:[%s4211_s28 + $0x2c0] sm:$0xff] }
  0x8d   : > { %2841 = vmatpush1.bf16.msra.mxu0 %v4024_v20  ;;  %3130 = vmatpush1.bf16.msra.mxu1 %v4025_v21  ;;  %v287_v20 = vld [vmem:[%s4211_s28 + $0x2e0] sm:$0xff]  ;;  %v284_v21 = vld [vmem:[%s4211_s28 + $0x2c8] sm:$0xff] }
  0x8e   : > { %2842 = vmatprep.subr.bf16.mxu0 %v4112_v0  ;;  %3131 = vmatprep.subr.bf16.mxu1 %v4112_v0  ;;  %v3703_v25 = vcombine.high %v283_v19, %v287_v20  ;;  %v3705_v26 = vcombine.high %v284_v21, %v288_v22  ;;  %v3704_v34 = vcombine.low %v284_v21, %v288_v22  ;;  %v4043_v4 = vld [vmem:[%s5097_s1 + $0x1c0] sm:$0xff]  }
  0x8f   : > { %v331_v9 = vld [vmem:[%s4211_s28 + $0x440] sm:$0xff] }
  0x90   : > { %v335_v10 = vld [vmem:[%s4211_s28 + $0x460] sm:$0xff] }
  0x91   : > { %2843 = vmatpush1.bf16.msra.mxu0 %v4026_v24  ;;  %3132 = vmatpush1.bf16.msra.mxu1 %v4027_v27  ;;  %v3696_v24 = vcombine.low %v276_v11, %v280_v12  ;;  %v291_v27 = vld [vmem:[%s4211_s28 + $0x300] sm:$0xff]  ;;  %v332_v11 = vld [vmem:[%s4211_s28 + $0x448] sm:$0xff]  ;;  %v3750_v21 = vcombine.low %v331_v9, %v335_v10 }
  0x92   : > { %2844 = vmatprep.subr.bf16.mxu0 %v4112_v0  ;;  %3133 = vmatprep.subr.bf16.mxu1 %v4112_v0  ;;  %v336_v12 = vld [vmem:[%s4211_s28 + $0x468] sm:$0xff] }
  0x93   : > { %2315 = vmatmul.mubr.bf16.gmra.mxu0 %v3646_v28  ;;  %2604 = vmatmul.mubr.bf16.gmra.mxu1 %v3648_v29  ;;  %v295_v28 = vld [vmem:[%s4211_s28 + $0x320] sm:$0xff]  ;;  %v292_v29 = vld [vmem:[%s4211_s28 + $0x308] sm:$0xff]  ;;  %v3752_v22 = vcombine.low %v332_v11, %v336_v12 }
  0x94   : > { %2322 = vmatprep.mubr.bf16.mxu0 %v3655_v30  ;;  %2611 = vmatprep.mubr.bf16.mxu1 %v3657_v31  ;;  %v296_v30 = vld [vmem:[%s4211_s28 + $0x328] sm:$0xff]  ;;  %v4038_v31 = vld [vmem:[%s5097_s1 + $0x150] sm:$0xff]   ;;  %v3711_v35 = vcombine.high %v291_v27, %v295_v28 }
  0x95   : > { %2845 = vmatpush2.bf16.msra.mxu0 %v4028_v32  ;;  %3134 = vmatpush2.bf16.msra.mxu1 %v4029_v33  ;;  %v4039_v32 = vld [vmem:[%s5097_s1 + $0x1d0] sm:$0xff]   ;;  %v3702_v33 = vcombine.low %v283_v19, %v287_v20  ;;  %v340_v19 = vld [vmem:[%s4211_s28 + $0x488] sm:$0xff] }
  0x96   : > { %2846 = vmatprep.subr.bf16.mxu0 %v4112_v0  ;;  %3135 = vmatprep.subr.bf16.mxu1 %v4112_v0  ;;  %v344_v20 = vld [vmem:[%s4211_s28 + $0x4a8] sm:$0xff] }
  0x99   : > { %2847 = vmatpush2.bf16.msra.mxu0 %v4030_v36  ;;  %3136 = vmatpush2.bf16.msra.mxu1 %v4031_v39  ;;  %v3713_v36 = vcombine.high %v292_v29, %v296_v30  ;;  %v300_v39 = vld [vmem:[%s4211_s28 + $0x348] sm:$0xff] }
  0x9a   : > { %2848 = vmatprep.subr.bf16.mxu0 %v4112_v0  ;;  %3137 = vmatprep.subr.bf16.mxu1 %v4112_v0 }
  0x9b   : > { %2323 = vmatmul.mubr.bf16.gmra.mxu0 %v3654_v40  ;;  %2612 = vmatmul.mubr.bf16.gmra.mxu1 %v3656_v41  ;;  %v304_v40 = vld [vmem:[%s4211_s28 + $0x368] sm:$0xff]  ;;  %v3710_v41 = vcombine.low %v291_v27, %v295_v28 }
  0x9c   : > { %2330 = vmatprep.mubr.bf16.mxu0 %v3663_v42  ;;  %2619 = vmatprep.mubr.bf16.mxu1 %v3665_v43  ;;  %v3712_v42 = vcombine.low %v292_v29, %v296_v30  ;;  %v3719_v43 = vcombine.high %v299_v37, %v303_v38  ;;  %v348_v27 = vld [vmem:[%s4211_s28 + $0x4c8] sm:$0xff]  ;;  %v3760_v30 = vcombine.low %v340_v19, %v344_v20 }
  0x9d   : > { %2849 = vmatpush2.bf16.msra.mxu0 %v4032_v44  ;;  %3138 = vmatpush2.bf16.msra.mxu1 %v4033_v45  ;;  %v3721_v44 = vcombine.high %v300_v39, %v304_v40  ;;  %v307_v45 = vld [vmem:[%s4211_s28 + $0x380] sm:$0xff]  ;;  %v352_v28 = vld [vmem:[%s4211_s28 + $0x4e8] sm:$0xff] }
  0x9e   : > { %2850 = vmatprep.subr.bf16.mxu0 %v4112_v0  ;;  %3139 = vmatprep.subr.bf16.mxu1 %v4112_v0  ;;  %v3726_v59 = vcombine.low %v307_v45, %v311_v46 }
  0xa1   : > { %2851 = vmatpush2.bf16.msra.mxu0 %v4034_v54  ;;  %3140 = vmatpush2.bf16.msra.mxu1 %v4035_v55  ;;  %v3729_v54 = vcombine.high %v308_v47, %v312_v48  ;;  %v315_v55 = vld [vmem:[%s4211_s28 + $0x3c0] sm:$0xff] }
  0xa2   : > { %2852 = vmatprep.subr.bf16.mxu0 %v4112_v0  ;;  %3141 = vmatprep.subr.bf16.mxu1 %v4112_v0 }
  0xa3   : > { %2331 = vmatmul.mubr.bf16.gmra.mxu0 %v3662_v50  ;;  %2620 = vmatmul.mubr.bf16.gmra.mxu1 %v3664_v51  ;;  %v4041_v50 = vld [vmem:[%s5097_s1 + $0x1c8] sm:$0xff]   ;;  %v3718_v51 = vcombine.low %v299_v37, %v303_v38  ;;  %v3768_v38 = vcombine.low %v348_v27, %v352_v28 }
  0xa4   : > { %2338 = vmatprep.mubr.bf16.mxu0 %v3671_v52  ;;  %2627 = vmatprep.mubr.bf16.mxu1 %v3673_v53  ;;  %v3720_v52 = vcombine.low %v300_v39, %v304_v40  ;;  %v3727_v53 = vcombine.high %v307_v45, %v311_v46 }
  0xa5   : > { %2853 = vmatpush2.bf16.msra.mxu0 %v4036_v13  ;;  %3142 = vmatpush2.bf16.msra.mxu1 %v4037_v14  ;;  %v3744_v14 = vcombine.low %v324_v1, %v328_v2 }
  0xa6   : > { %2854 = vmatprep.subr.bf16.mxu0 %v4112_v0  ;;  %3143 = vmatprep.subr.bf16.mxu1 %v4112_v0 }
  0xa9   : > { %2855 = vmatpush2.bf16.msra.mxu0 %v4038_v31  ;;  %3144 = vmatpush2.bf16.msra.mxu1 %v4039_v32  ;;  %v3769_v32 = vcombine.high %v348_v27, %v352_v28  ;;  %v408_v27 = vld [vmem:[%s4211_s28 + $0x6a8] sm:$0xff] }
  0xaa   : > { %2856 = vmatprep.subr.bf16.mxu0 %v4112_v0  ;;  %3145 = vmatprep.subr.bf16.mxu1 %v4112_v0 }
  0xab   : > { %2339 = vmatmul.mubr.bf16.gmra.mxu0 %v3670_v60  ;;  %2628 = vmatmul.mubr.bf16.gmra.mxu1 %v3672_v61  ;;  %v3728_v60 = vcombine.low %v308_v47, %v312_v48  ;;  %v3735_v61 = vcombine.high %v315_v55, %v319_v56 }
  0xac   : > { %2346 = vmatprep.mubr.bf16.mxu0 %v3679_v62  ;;  %2635 = vmatprep.mubr.bf16.mxu1 %v3681_v63  ;;  %v3737_v62 = vcombine.high %v316_v57, %v320_v58  ;;  %v327_v63 = vld [vmem:[%s4211_s28 + $0x420] sm:$0xff] }
  0xad   : > { %2857 = vmatpush2.bf16.msra.mxu0 %v4040_v49  ;;  %3146 = vmatpush2.bf16.msra.mxu1 %v4041_v50  ;;  %v371_v49 = vld [vmem:[%s4211_s28 + $0x580] sm:$0xff] }
  0xae   : > { %2858 = vmatprep.subr.bf16.mxu0 %v4112_v0  ;;  %3147 = vmatprep.subr.bf16.mxu1 %v4112_v0  ;;  %v323_v0 = vld [vmem:[%s4211_s28 + $0x400] sm:$0xff] }
  0xaf   : > { %v3742_v13 = vcombine.low %v323_v0, %v327_v63  ;;  %v375_v50 = vld [vmem:[%s4211_s28 + $0x5a0] sm:$0xff] }
  0xb1   : > { %2859 = vmatpush2.bf16.msra.mxu0 %v4042_v3  ;;  %3148 = vmatpush2.bf16.msra.mxu1 %v4043_v4  ;;  %v388_v3 = vld [vmem:[%s4211_s28 + $0x608] sm:$0xff] }
  0xb2   : > { %v392_v4 = vld [vmem:[%s4211_s28 + $0x628] sm:$0xff] }
  0xb3   : > { %2347 = vmatmul.mubr.bf16.gmra.mxu0 %v3678_v5  ;;  %2636 = vmatmul.mubr.bf16.gmra.mxu1 %v3680_v6  ;;  %v3734_v5 = vcombine.low %v315_v55, %v319_v56  ;;  %v3736_v6 = vcombine.low %v316_v57, %v320_v58  ;;  %v3791_v55 = vcombine.high %v371_v49, %v375_v50  ;;  %v379_v57 = vld [vmem:[%s4211_s28 + $0x5c0] sm:$0xff] }
  0xb4   : > { %2354 = vmatprep.mubr.bf16.mxu0 %v3687_v7  ;;  %2643 = vmatprep.mubr.bf16.mxu1 %v3689_v8  ;;  %v3743_v7 = vcombine.high %v323_v0, %v327_v63  ;;  %v3745_v8 = vcombine.high %v324_v1, %v328_v2  ;;  %v383_v58 = vld [vmem:[%s4211_s28 + $0x5e0] sm:$0xff] }
  0xb5   : > { %v3799_v0 = vcombine.high %v379_v57, %v383_v58  ;;  %v387_v1 = vld [vmem:[%s4211_s28 + $0x600] sm:$0xff] }
  0xb6   : > { %v391_v2 = vld [vmem:[%s4211_s28 + $0x620] sm:$0xff] }
  0xbb   : > { %2355 = vmatmul.mubr.bf16.gmra.mxu0 %v3686_v15  ;;  %2644 = vmatmul.mubr.bf16.gmra.mxu1 %v3688_v16  ;;  %v3751_v15 = vcombine.high %v331_v9, %v335_v10  ;;  %v3753_v16 = vcombine.high %v332_v11, %v336_v12  ;;  %v395_v9 = vld [vmem:[%s4211_s28 + $0x640] sm:$0xff]  ;;  %v396_v11 = vld [vmem:[%s4211_s28 + $0x648] sm:$0xff] }
  0xbc   : > { %2362 = vmatprep.mubr.bf16.mxu0 %v3695_v17  ;;  %2651 = vmatprep.mubr.bf16.mxu1 %v3697_v18  ;;  %v339_v17 = vld [vmem:[%s4211_s28 + $0x480] sm:$0xff]  ;;  %v400_v12 = vld [vmem:[%s4211_s28 + $0x668] sm:$0xff] }
  0xbd   : > { %v343_v18 = vld [vmem:[%s4211_s28 + $0x4a0] sm:$0xff] }
  0xbe   : > { %v3758_v29 = vcombine.low %v339_v17, %v343_v18  ;;  %v399_v10 = vld [vmem:[%s4211_s28 + $0x660] sm:$0xff] }
  0xc3   : > { %2363 = vmatmul.mubr.bf16.gmra.mxu0 %v3694_v23  ;;  %2652 = vmatmul.mubr.bf16.gmra.mxu1 %v3696_v24  ;;  %v3759_v23 = vcombine.high %v339_v17, %v343_v18  ;;  %v3761_v24 = vcombine.high %v340_v19, %v344_v20  ;;  %v3817_v17 = vcombine.high %v396_v11, %v400_v12 }
  0xc4   : > { %2370 = vmatprep.mubr.bf16.mxu0 %v3703_v25  ;;  %2659 = vmatprep.mubr.bf16.mxu1 %v3705_v26  ;;  %v347_v25 = vld [vmem:[%s4211_s28 + $0x4c0] sm:$0xff] }
  0xc5   : > { %v351_v26 = vld [vmem:[%s4211_s28 + $0x4e0] sm:$0xff] }
  0xc6   : > { %v3767_v31 = vcombine.high %v347_v25, %v351_v26  ;;  %v3766_v37 = vcombine.low %v347_v25, %v351_v26  ;;  %v404_v26 = vld [vmem:[%s4211_s28 + $0x688] sm:$0xff] }
  0xcb   : > { %2371 = vmatmul.mubr.bf16.gmra.mxu0 %v3702_v33  ;;  %2660 = vmatmul.mubr.bf16.gmra.mxu1 %v3704_v34  ;;  %v355_v33 = vld [vmem:[%s4211_s28 + $0x500] sm:$0xff] }
  0xcc   : > { %2378 = vmatprep.mubr.bf16.mxu0 %v3711_v35  ;;  %2667 = vmatprep.mubr.bf16.mxu1 %v3713_v36  ;;  %v359_v34 = vld [vmem:[%s4211_s28 + $0x520] sm:$0xff]  ;;  %v356_v35 = vld [vmem:[%s4211_s28 + $0x508] sm:$0xff] }
  0xcd   : > { %v360_v36 = vld [vmem:[%s4211_s28 + $0x528] sm:$0xff]  ;;  %v3775_v39 = vcombine.high %v355_v33, %v359_v34  ;;  %v3774_v45 = vcombine.low %v355_v33, %v359_v34 }
  0xce   : > { %v3777_v40 = vcombine.high %v356_v35, %v360_v36  ;;  %v3776_v46 = vcombine.low %v356_v35, %v360_v36  ;;  %v3825_v35 = vcombine.high %v404_v26, %v408_v27 }
  0xd3   : > { %2379 = vmatmul.mubr.bf16.gmra.mxu0 %v3710_v41  ;;  %2668 = vmatmul.mubr.bf16.gmra.mxu1 %v3712_v42  ;;  %v363_v41 = vld [vmem:[%s4211_s28 + $0x540] sm:$0xff] }
  0xd4   : > { %2386 = vmatprep.mubr.bf16.mxu0 %v3719_v43  ;;  %2675 = vmatprep.mubr.bf16.mxu1 %v3721_v44  ;;  %v367_v42 = vld [vmem:[%s4211_s28 + $0x560] sm:$0xff]  ;;  %v364_v43 = vld [vmem:[%s4211_s28 + $0x548] sm:$0xff] }
  0xd5   : > { %v368_v44 = vld [vmem:[%s4211_s28 + $0x568] sm:$0xff]  ;;  %v3783_v47 = vcombine.high %v363_v41, %v367_v42 }
  0xd6   : > { %v3785_v48 = vcombine.high %v364_v43, %v368_v44 }
  0xdb   : > { %2387 = vmatmul.mubr.bf16.gmra.mxu0 %v3718_v51  ;;  %2676 = vmatmul.mubr.bf16.gmra.mxu1 %v3720_v52  ;;  %v372_v51 = vld [vmem:[%s4211_s28 + $0x588] sm:$0xff] }
  0xdc   : > { %2394 = vmatprep.mubr.bf16.mxu0 %v3727_v53  ;;  %2683 = vmatprep.mubr.bf16.mxu1 %v3729_v54  ;;  %v376_v52 = vld [vmem:[%s4211_s28 + $0x5a8] sm:$0xff]  ;;  %v3782_v53 = vcombine.low %v363_v41, %v367_v42  ;;  %v3784_v54 = vcombine.low %v364_v43, %v368_v44  ;;  %v411_v42 = vld [vmem:[%s4211_s28 + $0x6c0] sm:$0xff] }
  0xdd   : > { %v3793_v56 = vcombine.high %v372_v51, %v376_v52  ;;  %v415_v43 = vld [vmem:[%s4211_s28 + $0x6e0] sm:$0xff] }
  0xe3   : > { %2395 = vmatmul.mubr.bf16.gmra.mxu0 %v3726_v59  ;;  %2684 = vmatmul.mubr.bf16.gmra.mxu1 %v3728_v60  ;;  %v380_v59 = vld [vmem:[%s4211_s28 + $0x5c8] sm:$0xff] }
  0xe4   : > { %2402 = vmatprep.mubr.bf16.mxu0 %v3735_v61  ;;  %2691 = vmatprep.mubr.bf16.mxu1 %v3737_v62  ;;  %v384_v60 = vld [vmem:[%s4211_s28 + $0x5e8] sm:$0xff]  ;;  %v3790_v61 = vcombine.low %v371_v49, %v375_v50  ;;  %v3792_v62 = vcombine.low %v372_v51, %v376_v52  ;;  %v3824_v52 = vcombine.low %v404_v26, %v408_v27 }
  0xe5   : > { %v3801_v63 = vcombine.high %v380_v59, %v384_v60 }
  0xeb   : > { %2403 = vmatmul.mubr.bf16.gmra.mxu0 %v3734_v5  ;;  %2692 = vmatmul.mubr.bf16.gmra.mxu1 %v3736_v6  ;;  %v3798_v5 = vcombine.low %v379_v57, %v383_v58  ;;  %v3800_v6 = vcombine.low %v380_v59, %v384_v60 }
  0xec   : > { %2410 = vmatprep.mubr.bf16.mxu0 %v3743_v7  ;;  %2699 = vmatprep.mubr.bf16.mxu1 %v3745_v8  ;;  %v3807_v7 = vcombine.high %v387_v1, %v391_v2  ;;  %v3809_v8 = vcombine.high %v388_v3, %v392_v4 }
  0xf3   : > { %2411 = vmatmul.mubr.bf16.gmra.mxu0 %v3742_v13  ;;  %2700 = vmatmul.mubr.bf16.gmra.mxu1 %v3744_v14  ;;  %v3806_v13 = vcombine.low %v387_v1, %v391_v2  ;;  %v3808_v14 = vcombine.low %v388_v3, %v392_v4  ;;  %v420_v2 = vld [vmem:[%s4211_s28 + $0x708] sm:$0xff] }
  0xf4   : > { %2418 = vmatprep.mubr.bf16.mxu0 %v3751_v15  ;;  %2707 = vmatprep.mubr.bf16.mxu1 %v3753_v16  ;;  %v3815_v15 = vcombine.high %v395_v9, %v399_v10  ;;  %v4596_v16 = vld [vmem:[%s5098_s2] ss:$0 sm:$0xff]  ;;  %v424_v3 = vld [vmem:[%s4211_s28 + $0x728] sm:$0xff] }
  0xfb   : > { %2419 = vmatmul.mubr.bf16.gmra.mxu0 %v3750_v21  ;;  %2708 = vmatmul.mubr.bf16.gmra.mxu1 %v3752_v22  ;;  %v403_v22 = vld [vmem:[%s4211_s28 + $0x680] sm:$0xff] }
  0xfc   : > { %2426 = vmatprep.mubr.bf16.mxu0 %v3759_v23  ;;  %2715 = vmatprep.mubr.bf16.mxu1 %v3761_v24  ;;  %v407_v23 = vld [vmem:[%s4211_s28 + $0x6a0] sm:$0xff] }
  0xfd   : > { %v3823_v33 = vcombine.high %v403_v22, %v407_v23  ;;  %v3822_v49 = vcombine.low %v403_v22, %v407_v23  ;;  %v428_v23 = vld [vmem:[%s4211_s28 + $0x748] sm:$0xff] }
 0x103   : > { %2427 = vmatmul.mubr.bf16.gmra.mxu0 %v3758_v29  ;;  %2716 = vmatmul.mubr.bf16.gmra.mxu1 %v3760_v30  ;;  %v3814_v29 = vcombine.low %v395_v9, %v399_v10 }
 0x104   : > { %2434 = vmatprep.mubr.bf16.mxu0 %v3767_v31  ;;  %2723 = vmatprep.mubr.bf16.mxu1 %v3769_v32  ;;  %v3816_v32 = vcombine.low %v396_v11, %v400_v12  ;;  %v3841_v11 = vcombine.high %v420_v2, %v424_v3 }
 0x10b   : > { %2435 = vmatmul.mubr.bf16.gmra.mxu0 %v3766_v37  ;;  %2724 = vmatmul.mubr.bf16.gmra.mxu1 %v3768_v38 }
 0x10c   : > { %2442 = vmatprep.mubr.bf16.mxu0 %v3775_v39  ;;  %2731 = vmatprep.mubr.bf16.mxu1 %v3777_v40 }
 0x113   : > { %2443 = vmatmul.mubr.bf16.gmra.mxu0 %v3774_v45  ;;  %2732 = vmatmul.mubr.bf16.gmra.mxu1 %v3776_v46  ;;  %v412_v46 = vld [vmem:[%s4211_s28 + $0x6c8] sm:$0xff] }
 0x114   : > { %2450 = vmatprep.mubr.bf16.mxu0 %v3783_v47  ;;  %2739 = vmatprep.mubr.bf16.mxu1 %v3785_v48  ;;  %v416_v47 = vld [vmem:[%s4211_s28 + $0x6e8] sm:$0xff] }
 0x11b   : > { %2451 = vmatmul.mubr.bf16.gmra.mxu0 %v3782_v53  ;;  %2740 = vmatmul.mubr.bf16.gmra.mxu1 %v3784_v54  ;;  %v3831_v53 = vcombine.high %v411_v42, %v415_v43 }
 0x11c   : > { %2458 = vmatprep.mubr.bf16.mxu0 %v3791_v55  ;;  %2747 = vmatprep.mubr.bf16.mxu1 %v3793_v56  ;;  %v3833_v55 = vcombine.high %v412_v46, %v416_v47 }
 0x123   : > { %2459 = vmatmul.mubr.bf16.gmra.mxu0 %v3790_v61  ;;  %2748 = vmatmul.mubr.bf16.gmra.mxu1 %v3792_v62  ;;  %v419_v62 = vld [vmem:[%s4211_s28 + $0x700] sm:$0xff] }
 0x124   : > { %2466 = vmatprep.mubr.bf16.mxu0 %v3799_v0  ;;  %2755 = vmatprep.mubr.bf16.mxu1 %v3801_v63  ;;  %v423_v0 = vld [vmem:[%s4211_s28 + $0x720] sm:$0xff] }
 0x125   : > { %v3839_v9 = vcombine.high %v419_v62, %v423_v0  ;;  %v3838_v27 = vcombine.low %v419_v62, %v423_v0  ;;  %v443_v0 = vld [vmem:[%s4211_s28 + $0x7c0] sm:$0xff] }
 0x12b   : > { %2467 = vmatmul.mubr.bf16.gmra.mxu0 %v3798_v5  ;;  %2756 = vmatmul.mubr.bf16.gmra.mxu1 %v3800_v6  ;;  %v3830_v5 = vcombine.low %v411_v42, %v415_v43  ;;  %v439_v42 = vld [vmem:[%s4211_s28 + $0x7a0] sm:$0xff] }
 0x12c   : > { %2474 = vmatprep.mubr.bf16.mxu0 %v3807_v7  ;;  %2763 = vmatprep.mubr.bf16.mxu1 %v3809_v8  ;;  %v3832_v8 = vcombine.low %v412_v46, %v416_v47  ;;  %v436_v46 = vld [vmem:[%s4211_s28 + $0x788] sm:$0xff] }
 0x12d   : > { %v440_v47 = vld [vmem:[%s4211_s28 + $0x7a8] sm:$0xff] }
 0x133   : > { %v2284_v18 = vpop.f32.mrf.mxu0  ;;  %2475 = vmatmul.mubr.bf16.gmra.mxu0 %v3806_v13  ;;  %v2573_v20 = vpop.f32.mrf.mxu1  ;;  %2764 = vmatmul.mubr.bf16.gmra.mxu1 %v3808_v14 }
 0x134   : > { %v2285_v19 = vadd.f32 %v4596_v16, %v2284_v18  ;;  %2482 = vmatprep.mubr.bf16.mxu0 %v3815_v15  ;;  %2771 = vmatprep.mubr.bf16.mxu1 %v3817_v17 }
 0x135   : > { %v2286_v21 = vpop.f32.mrf.mxu0  ;;  %v2575_v25 = vpop.f32.mrf.mxu1 }
 0x136   : > { %v4601_v24 = vadd.f32 %v2573_v20, %v2285_v19  ;;  %v427_v19 = vld [vmem:[%s4211_s28 + $0x740] sm:$0xff]  ;;  %v432_v25 = vld [vmem:[%s4211_s28 + $0x768] sm:$0xff] }
 0x137   : > { %v2287_v28 = vpop.f32.mrf.mxu0  ;;  %v2576_v31 = vpop.f32.mrf.mxu1  ;;  %v431_v20 = vld [vmem:[%s4211_s28 + $0x760] sm:$0xff] }
 0x138   : > { %v2288_v30 = vadd.f32 %v4596_v16, %v2287_v28 }
 0x139   : > { %v2289_v34 = vpop.f32.mrf.mxu0  ;;  %v2578_v37 = vpop.f32.mrf.mxu1 }
 0x13a   : > { %v4606_v36 = vadd.f32 %v2576_v31, %v2288_v30  ;;  %v3840_v30 = vcombine.low %v420_v2, %v424_v3  ;;  %v3847_v31 = vcombine.high %v427_v19, %v431_v20 }
 0x13b   : > { %v2292_v38 = vpop.f32.mrf.mxu0  ;;  %2483 = vmatmul.mubr.bf16.gmra.mxu0 %v3814_v29  ;;  %v2581_v40 = vpop.f32.mrf.mxu1  ;;  %2772 = vmatmul.mubr.bf16.gmra.mxu1 %v3816_v32 }
 0x13c   : > { %v2293_v39 = vadd.f32 %v4596_v16, %v2292_v38  ;;  %2490 = vmatprep.mubr.bf16.mxu0 %v3823_v33  ;;  %2779 = vmatprep.mubr.bf16.mxu1 %v3825_v35  ;;  %v3849_v33 = vcombine.high %v428_v23, %v432_v25 }
 0x13d   : > { %v2294_v41 = vpop.f32.mrf.mxu0  ;;  %v2583_v45 = vpop.f32.mrf.mxu1 }
 0x13e   : > { %v4611_v44 = vadd.f32 %v2581_v40, %v2293_v39  ;;  %v435_v41 = vld [vmem:[%s4211_s28 + $0x780] sm:$0xff] }
 0x13f   : > { %v2295_v48 = vpop.f32.mrf.mxu0  ;;  %v2584_v51 = vpop.f32.mrf.mxu1 }
 0x140   : > { %v2296_v50 = vadd.f32 %v4596_v16, %v2295_v48 }
 0x141   : > { %v2297_v54 = vpop.f32.mrf.mxu0  ;;  %v2586_v57 = vpop.f32.mrf.mxu1 }
 0x142   : > { %v4616_v56 = vadd.f32 %v2584_v51, %v2296_v50 }
 0x143   : > { %v2300_v58 = vpop.f32.mrf.mxu0  ;;  %2491 = vmatmul.mubr.bf16.gmra.mxu0 %v3822_v49  ;;  %v2589_v60 = vpop.f32.mrf.mxu1  ;;  %2780 = vmatmul.mubr.bf16.gmra.mxu1 %v3824_v52  ;;  %v3846_v49 = vcombine.low %v427_v19, %v431_v20  ;;  %v3848_v52 = vcombine.low %v428_v23, %v432_v25  ;;  %v197_v23 = vld [vmem:[%s4211_s28 + $0x10] sm:$0xff] }
 0x144   : > { %v2301_v59 = vadd.f32 %v4596_v16, %v2300_v58  ;;  %2498 = vmatprep.mubr.bf16.mxu0 %v3831_v53  ;;  %2787 = vmatprep.mubr.bf16.mxu1 %v3833_v55  ;;  %v3855_v53 = vcombine.high %v435_v41, %v439_v42  ;;  %v3857_v55 = vcombine.high %v436_v46, %v440_v47  ;;  %v201_v25 = vld [vmem:[%s4211_s28 + $0x30] sm:$0xff] }
 0x145   : > { %v2302_v61 = vpop.f32.mrf.mxu0  ;;  %v2591_v1 = vpop.f32.mrf.mxu1 }
 0x146   : > { %v4621_v63 = vadd.f32 %v2589_v60, %v2301_v59  ;;  %v447_v1 = vld [vmem:[%s4211_s28 + $0x7e0] sm:$0xff] }
 0x147   : > { %v2303_v4 = vpop.f32.mrf.mxu0  ;;  %v2592_v7 = vpop.f32.mrf.mxu1 }
 0x148   : > { %v2304_v6 = vadd.f32 %v4596_v16, %v2303_v4  ;;  %v444_v4 = vld [vmem:[%s4211_s28 + $0x7c8] sm:$0xff] }
 0x149   : > { %v2305_v10 = vpop.f32.mrf.mxu0  ;;  %v2594_v13 = vpop.f32.mrf.mxu1 }
 0x14a   : > { %v4626_v12 = vadd.f32 %v2592_v7, %v2304_v6  ;;  %v3854_v7 = vcombine.low %v435_v41, %v439_v42  ;;  %v3856_v10 = vcombine.low %v436_v46, %v440_v47 }
 0x14b   : > { %v2308_v14 = vpop.f32.mrf.mxu0  ;;  %2499 = vmatmul.mubr.bf16.gmra.mxu0 %v3830_v5  ;;  %v2597_v17 = vpop.f32.mrf.mxu1  ;;  %2788 = vmatmul.mubr.bf16.gmra.mxu1 %v3832_v8  ;;  %v448_v5 = vld [vmem:[%s4211_s28 + $0x7e8] sm:$0xff] }
 0x14c   : > { %v2309_v15 = vadd.f32 %v4596_v16, %v2308_v14  ;;  %2506 = vmatprep.mubr.bf16.mxu0 %v3839_v9  ;;  %2795 = vmatprep.mubr.bf16.mxu1 %v3841_v11  ;;  %v3863_v11 = vcombine.high %v443_v0, %v447_v1  ;;  %v3865_v14 = vcombine.high %v444_v4, %v448_v5 }
 0x14d   : > { %v2310_v18 = vpop.f32.mrf.mxu0  ;;  %v2599_v22 = vpop.f32.mrf.mxu1 }
 0x14e   : > { %v4631_v21 = vadd.f32 %v2597_v17, %v2309_v15 }
 0x14f   : > { %v2311_v26 = vpop.f32.mrf.mxu0  ;;  %v2600_v29 = vpop.f32.mrf.mxu1 }
 0x150   : > { %v2312_v28 = vadd.f32 %v4596_v16, %v2311_v26 }
 0x151   : > { %v2313_v32 = vpop.f32.mrf.mxu0  ;;  %v2602_v35 = vpop.f32.mrf.mxu1 }
 0x152   : > { %v4636_v34 = vadd.f32 %v2600_v29, %v2312_v28  ;;  %v198_v28 = vld [vmem:[%s4211_s28 + $0x18] sm:$0xff]  ;;  %v3864_v35 = vcombine.low %v444_v4, %v448_v5 }
 0x153   : > { %v2316_v37 = vpop.f32.mrf.mxu0  ;;  %2507 = vmatmul.mubr.bf16.gmra.mxu0 %v3838_v27  ;;  %v2605_v39 = vpop.f32.mrf.mxu1  ;;  %2796 = vmatmul.mubr.bf16.gmra.mxu1 %v3840_v30  ;;  %v202_v29 = vld [vmem:[%s4211_s28 + $0x38] sm:$0xff] }
 0x154   : > { %v2317_v38 = vadd.f32 %v4596_v16, %v2316_v37  ;;  %2514 = vmatprep.mubr.bf16.mxu0 %v3847_v31  ;;  %2803 = vmatprep.mubr.bf16.mxu1 %v3849_v33  ;;  %v3862_v31 = vcombine.low %v443_v0, %v447_v1  ;;  %v3619_v37 = vcombine.high %v197_v23, %v201_v25 }
 0x155   : > { %v2318_v40 = vpop.f32.mrf.mxu0  ;;  %v2607_v45 = vpop.f32.mrf.mxu1 }
 0x156   : > { %v4641_v43 = vadd.f32 %v2605_v39, %v2317_v38  ;;  %v3621_v39 = vcombine.high %v198_v28, %v202_v29 }
 0x157   : > { %v2319_v48 = vpop.f32.mrf.mxu0  ;;  %v2608_v51 = vpop.f32.mrf.mxu1 }
 0x158   : > { %v2320_v50 = vadd.f32 %v4596_v16, %v2319_v48  ;;  %v205_v48 = vld [vmem:[%s4211_s28 + $0x50] sm:$0xff] }
 0x159   : > { %v2321_v54 = vpop.f32.mrf.mxu0  ;;  %v2610_v58 = vpop.f32.mrf.mxu1 }
 0x15a   : > { %v4646_v57 = vadd.f32 %v2608_v51, %v2320_v50 }
 0x15b   : > { %v2324_v59 = vpop.f32.mrf.mxu0  ;;  %2515 = vmatmul.mubr.bf16.gmra.mxu0 %v3846_v49  ;;  %v2613_v61 = vpop.f32.mrf.mxu1  ;;  %2804 = vmatmul.mubr.bf16.gmra.mxu1 %v3848_v52  ;;  %v209_v49 = vld [vmem:[%s4211_s28 + $0x70] sm:$0xff]  ;;  %v206_v52 = vld [vmem:[%s4211_s28 + $0x58] sm:$0xff] }
 0x15c   : > { %v2325_v60 = vadd.f32 %v4596_v16, %v2324_v59  ;;  %2522 = vmatprep.mubr.bf16.mxu0 %v3855_v53  ;;  %2811 = vmatprep.mubr.bf16.mxu1 %v3857_v55  ;;  %v210_v53 = vld [vmem:[%s4211_s28 + $0x78] sm:$0xff]  ;;  %v3618_v55 = vcombine.low %v197_v23, %v201_v25 }
 0x15d   : > { %v2326_v62 = vpop.f32.mrf.mxu0  ;;  %v2615_v3 = vpop.f32.mrf.mxu1  ;;  %v3629_v0 = vcombine.high %v206_v52, %v210_v53 }
 0x15e   : > { %v4651_v2 = vadd.f32 %v2613_v61, %v2325_v60  ;;  %v3620_v60 = vcombine.low %v198_v28, %v202_v29  ;;  %v3627_v61 = vcombine.high %v205_v48, %v209_v49 }
 0x15f   : > { %v2327_v6 = vpop.f32.mrf.mxu0  ;;  %v2616_v9 = vpop.f32.mrf.mxu1 }
 0x160   : > { %v2328_v8 = vadd.f32 %v4596_v16, %v2327_v6 }
 0x161   : > { %v2329_v13 = vpop.f32.mrf.mxu0  ;;  %v2618_v17 = vpop.f32.mrf.mxu1 }
 0x162   : > { %v4656_v15 = vadd.f32 %v2616_v9, %v2328_v8  ;;  %v213_v8 = vld [vmem:[%s4211_s28 + $0x90] sm:$0xff]  ;;  %v214_v13 = vld [vmem:[%s4211_s28 + $0x98] sm:$0xff] }
 0x163   : > { %v2332_v18 = vpop.f32.mrf.mxu0  ;;  %2523 = vmatmul.mubr.bf16.gmra.mxu0 %v3854_v7  ;;  %v2621_v20 = vpop.f32.mrf.mxu1  ;;  %2812 = vmatmul.mubr.bf16.gmra.mxu1 %v3856_v10  ;;  %v217_v9 = vld [vmem:[%s4211_s28 + $0xb0] sm:$0xff] }
 0x164   : > { %v2333_v19 = vadd.f32 %v4596_v16, %v2332_v18  ;;  %2530 = vmatprep.mubr.bf16.mxu0 %v3863_v11  ;;  %2819 = vmatprep.mubr.bf16.mxu1 %v3865_v14  ;;  %v218_v14 = vld [vmem:[%s4211_s28 + $0xb8] sm:$0xff]  ;;  %v3626_v18 = vcombine.low %v205_v48, %v209_v49  ;;  %v3635_v23 = vcombine.high %v213_v8, %v217_v9 }
 0x165   : > { %v2334_v22 = vpop.f32.mrf.mxu0  ;;  %v2623_v27 = vpop.f32.mrf.mxu1  ;;  %v3636_v49 = vcombine.low %v214_v13, %v218_v14 }
 0x166   : > { %v4661_v26 = vadd.f32 %v2621_v20, %v2333_v19  ;;  %v3628_v22 = vcombine.low %v206_v52, %v210_v53  ;;  %v3637_v27 = vcombine.high %v214_v13, %v218_v14 }
 0x167   : > { %v2335_v30 = vpop.f32.mrf.mxu0  ;;  %v2624_v33 = vpop.f32.mrf.mxu1 }
 0x168   : > { %v2336_v32 = vadd.f32 %v4596_v16, %v2335_v30 }
 0x169   : > { %v2337_v38 = vpop.f32.mrf.mxu0  ;;  %v2626_v41 = vpop.f32.mrf.mxu1 }
 0x16a   : > { %v4666_v40 = vadd.f32 %v2624_v33, %v2336_v32  ;;  %v222_v41 = vld [vmem:[%s4211_s28 + $0xd8] sm:$0xff] }
 0x16b   : > { %v2340_v42 = vpop.f32.mrf.mxu0  ;;  %2531 = vmatmul.mubr.bf16.gmra.mxu0 %v3862_v31  ;;  %v2629_v46 = vpop.f32.mrf.mxu1  ;;  %2820 = vmatmul.mubr.bf16.gmra.mxu1 %v3864_v35  ;;  %v221_v35 = vld [vmem:[%s4211_s28 + $0xd0] sm:$0xff] }
 0x16c   : > { %v2341_v45 = vadd.f32 %v4596_v16, %v2340_v42  ;;  %2860 = vmatprep.mubr.bf16.mxu0 %v3619_v37  ;;  %3149 = vmatprep.mubr.bf16.mxu1 %v3621_v39  ;;  %v225_v37 = vld [vmem:[%s4211_s28 + $0xf0] sm:$0xff]  ;;  %v226_v42 = vld [vmem:[%s4211_s28 + $0xf8] sm:$0xff] }
 0x16d   : > { %v2342_v47 = vpop.f32.mrf.mxu0  ;;  %v2631_v51 = vpop.f32.mrf.mxu1  ;;  %v3645_v53 = vcombine.high %v222_v41, %v226_v42  ;;  %v3644_v13 = vcombine.low %v222_v41, %v226_v42 }
 0x16e   : > { %v4671_v50 = vadd.f32 %v2629_v46, %v2341_v45  ;;  %v3634_v46 = vcombine.low %v213_v8, %v217_v9  ;;  %v3643_v51 = vcombine.high %v221_v35, %v225_v37  ;;  %v3642_v8 = vcombine.low %v221_v35, %v225_v37  ;;  %v242_v35 = vld [vmem:[%s4211_s28 + $0x178] sm:$0xff] }
 0x16f   : > { %v2343_v54 = vpop.f32.mrf.mxu0  ;;  %v2632_v59 = vpop.f32.mrf.mxu1 }
 0x170   : > { %v2344_v58 = vadd.f32 %v4596_v16, %v2343_v54 }
 0x171   : > { %v2345_v62 = vpop.f32.mrf.mxu0  ;;  %v2634_v3 = vpop.f32.mrf.mxu1 }
 0x172   : > { %v4676_v1 = vadd.f32 %v2632_v59, %v2344_v58  ;;  %v229_v62 = vld [vmem:[%s4211_s28 + $0x110] sm:$0xff] }
 0x173   : > { %v2348_v4 = vpop.f32.mrf.mxu0  ;;  %2861 = vmatmul.mubr.bf16.vlgmr.msra.gmra.mxu0 %v3618_v55  ;;  %v2637_v6 = vpop.f32.mrf.mxu1  ;;  %3150 = vmatmul.mubr.bf16.vlgmr.msra.gmra.mxu1 %v3620_v60 }
 0x174   : > { %v2349_v5 = vadd.f32 %v4596_v16, %v2348_v4  ;;  %2868 = vmatprep.mubr.bf16.mxu0 %v3627_v61  ;;  %3157 = vmatprep.mubr.bf16.mxu1 %v3629_v0  ;;  %v233_v0 = vld [vmem:[%s4211_s28 + $0x130] sm:$0xff] }
 0x175   : > { %v2350_v7 = vpop.f32.mrf.mxu0  ;;  %v2639_v11 = vpop.f32.mrf.mxu1  ;;  %v3651_v14 = vcombine.high %v229_v62, %v233_v0 }
 0x176   : > { %v4681_v10 = vadd.f32 %v2637_v6, %v2349_v5  ;;  %v230_v5 = vld [vmem:[%s4211_s28 + $0x118] sm:$0xff] }
 0x177   : > { %v2351_v17 = vpop.f32.mrf.mxu0  ;;  %v2640_v20 = vpop.f32.mrf.mxu1  ;;  %v234_v6 = vld [vmem:[%s4211_s28 + $0x138] sm:$0xff] }
 0x178   : > { %v2352_v19 = vadd.f32 %v4596_v16, %v2351_v17 }
 0x179   : > { %v2353_v25 = vpop.f32.mrf.mxu0  ;;  %v2642_v29 = vpop.f32.mrf.mxu1 }
 0x17a   : > { %v4686_v28 = vadd.f32 %v2640_v20, %v2352_v19  ;;  %v237_v29 = vld [vmem:[%s4211_s28 + $0x150] sm:$0xff] }
 0x17b   : > { %v2356_v30 = vpop.f32.mrf.mxu0  ;;  %2869 = vmatmul.mubr.bf16.gmra.mxu0 %v3626_v18  ;;  %v2645_v32 = vpop.f32.mrf.mxu1  ;;  %3158 = vmatmul.mubr.bf16.gmra.mxu1 %v3628_v22  ;;  %v3653_v18 = vcombine.high %v230_v5, %v234_v6 }
 0x17c   : > { %v2357_v31 = vadd.f32 %v4596_v16, %v2356_v30  ;;  %2876 = vmatprep.mubr.bf16.mxu0 %v3635_v23  ;;  %3165 = vmatprep.mubr.bf16.mxu1 %v3637_v27  ;;  %v241_v30 = vld [vmem:[%s4211_s28 + $0x170] sm:$0xff] }
 0x17d   : > { %v2358_v33 = vpop.f32.mrf.mxu0  ;;  %v2647_v39 = vpop.f32.mrf.mxu1 }
 0x17e   : > { %v4691_v38 = vadd.f32 %v2645_v32, %v2357_v31  ;;  %v238_v33 = vld [vmem:[%s4211_s28 + $0x158] sm:$0xff]  ;;  %v3650_v39 = vcombine.low %v229_v62, %v233_v0 }
 0x17f   : > { %v2359_v45 = vpop.f32.mrf.mxu0  ;;  %v2648_v48 = vpop.f32.mrf.mxu1  ;;  %v246_v0 = vld [vmem:[%s4211_s28 + $0x198] sm:$0xff] }
 0x180   : > { %v2360_v47 = vadd.f32 %v4596_v16, %v2359_v45  ;;  %v3652_v45 = vcombine.low %v230_v5, %v234_v6  ;;  %v3658_v6 = vcombine.low %v237_v29, %v241_v30 }
 0x181   : > { %v2361_v52 = vpop.f32.mrf.mxu0  ;;  %v2650_v55 = vpop.f32.mrf.mxu1 }
 0x182   : > { %v4696_v54 = vadd.f32 %v2648_v48, %v2360_v47  ;;  %v3661_v48 = vcombine.high %v238_v33, %v242_v35 }
 0x183   : > { %v2364_v58 = vpop.f32.mrf.mxu0  ;;  %2877 = vmatmul.mubr.bf16.gmra.mxu0 %v3634_v46  ;;  %v2653_v60 = vpop.f32.mrf.mxu1  ;;  %3166 = vmatmul.mubr.bf16.gmra.mxu1 %v3636_v49  ;;  %v3659_v46 = vcombine.high %v237_v29, %v241_v30  ;;  %v257_v29 = vld [vmem:[%s4211_s28 + $0x1f0] sm:$0xff] }
 0x184   : > { %v2365_v59 = vadd.f32 %v4596_v16, %v2364_v58  ;;  %2884 = vmatprep.mubr.bf16.mxu0 %v3643_v51  ;;  %3173 = vmatprep.mubr.bf16.mxu1 %v3645_v53 }
 0x185   : > { %v2366_v61 = vpop.f32.mrf.mxu0  ;;  %v2655_v4 = vpop.f32.mrf.mxu1 }
 0x186   : > { %v4701_v3 = vadd.f32 %v2653_v60, %v2365_v59  ;;  %v245_v59 = vld [vmem:[%s4211_s28 + $0x190] sm:$0xff]  ;;  %v250_v4 = vld [vmem:[%s4211_s28 + $0x1b8] sm:$0xff] }
 0x187   : > { %v2367_v7 = vpop.f32.mrf.mxu0  ;;  %v2656_v11 = vpop.f32.mrf.mxu1  ;;  %v249_v60 = vld [vmem:[%s4211_s28 + $0x1b0] sm:$0xff] }
 0x188   : > { %v2368_v9 = vadd.f32 %v4596_v16, %v2367_v7 }
 0x189   : > { %v2369_v17 = vpop.f32.mrf.mxu0  ;;  %v2658_v20 = vpop.f32.mrf.mxu1 }
 0x18a   : > { %v4706_v19 = vadd.f32 %v2656_v11, %v2368_v9  ;;  %v3660_v9 = vcombine.low %v238_v33, %v242_v35  ;;  %v3667_v11 = vcombine.high %v245_v59, %v249_v60  ;;  %v254_v33 = vld [vmem:[%s4211_s28 + $0x1d8] sm:$0xff] }
 0x18b   : > { %v2372_v22 = vpop.f32.mrf.mxu0  ;;  %2885 = vmatmul.mubr.bf16.gmra.mxu0 %v3642_v8  ;;  %v2661_v25 = vpop.f32.mrf.mxu1  ;;  %3174 = vmatmul.mubr.bf16.gmra.mxu1 %v3644_v13  ;;  %v258_v35 = vld [vmem:[%s4211_s28 + $0x1f8] sm:$0xff] }
 0x18c   : > { %v2373_v23 = vadd.f32 %v4596_v16, %v2372_v22  ;;  %2892 = vmatprep.mubr.bf16.mxu0 %v3651_v14  ;;  %3181 = vmatprep.mubr.bf16.mxu1 %v3653_v18  ;;  %v3669_v14 = vcombine.high %v246_v0, %v250_v4 }
 0x18d   : > { %v2374_v27 = vpop.f32.mrf.mxu0  ;;  %v2663_v32 = vpop.f32.mrf.mxu1 }
 0x18e   : > { %v4711_v31 = vadd.f32 %v2661_v25, %v2373_v23  ;;  %v253_v27 = vld [vmem:[%s4211_s28 + $0x1d0] sm:$0xff] }
 0x18f   : > { %v2375_v37 = vpop.f32.mrf.mxu0  ;;  %v2664_v42 = vpop.f32.mrf.mxu1 }
 0x190   : > { %v2376_v41 = vadd.f32 %v4596_v16, %v2375_v37 }
 0x191   : > { %v2377_v47 = vpop.f32.mrf.mxu0  ;;  %v2666_v51 = vpop.f32.mrf.mxu1 }
 0x192   : > { %v4716_v49 = vadd.f32 %v2664_v42, %v2376_v41 }
 0x193   : > { %v2380_v52 = vpop.f32.mrf.mxu0  ;;  %2893 = vmatmul.mubr.bf16.gmra.mxu0 %v3650_v39  ;;  %v2669_v55 = vpop.f32.mrf.mxu1  ;;  %3182 = vmatmul.mubr.bf16.gmra.mxu1 %v3652_v45  ;;  %v3666_v39 = vcombine.low %v245_v59, %v249_v60  ;;  %v3668_v45 = vcombine.low %v246_v0, %v250_v4  ;;  %v261_v60 = vld [vmem:[%s4211_s28 + $0x210] sm:$0xff] }
 0x194   : > { %v2381_v53 = vadd.f32 %v4596_v16, %v2380_v52  ;;  %2900 = vmatprep.mubr.bf16.mxu0 %v3659_v46  ;;  %3189 = vmatprep.mubr.bf16.mxu1 %v3661_v48  ;;  %v3675_v46 = vcombine.high %v253_v27, %v257_v29  ;;  %v3677_v48 = vcombine.high %v254_v33, %v258_v35 }
 0x195   : > { %v2382_v58 = vpop.f32.mrf.mxu0  ;;  %v2671_v62 = vpop.f32.mrf.mxu1 }
 0x196   : > { %v4721_v61 = vadd.f32 %v2669_v55, %v2381_v53  ;;  %v265_v62 = vld [vmem:[%s4211_s28 + $0x230] sm:$0xff] }
 0x197   : > { %v2383_v5 = vpop.f32.mrf.mxu0  ;;  %v2672_v8 = vpop.f32.mrf.mxu1 }
 0x198   : > { %v2384_v7 = vadd.f32 %v4596_v16, %v2383_v5  ;;  %v262_v5 = vld [vmem:[%s4211_s28 + $0x218] sm:$0xff] }
 0x199   : > { %v2385_v13 = vpop.f32.mrf.mxu0  ;;  %v2674_v18 = vpop.f32.mrf.mxu1 }
 0x19a   : > { %v4726_v17 = vadd.f32 %v2672_v8, %v2384_v7  ;;  %v3674_v8 = vcombine.low %v253_v27, %v257_v29  ;;  %v3676_v13 = vcombine.low %v254_v33, %v258_v35  ;;  %v269_v29 = vld [vmem:[%s4211_s28 + $0x250] sm:$0xff] }
 0x19b   : > { %v2388_v20 = vpop.f32.mrf.mxu0  ;;  %2901 = vmatmul.mubr.bf16.gmra.mxu0 %v3658_v6  ;;  %v2677_v23 = vpop.f32.mrf.mxu1  ;;  %3190 = vmatmul.mubr.bf16.gmra.mxu1 %v3660_v9  ;;  %v266_v6 = vld [vmem:[%s4211_s28 + $0x238] sm:$0xff] }
 0x19c   : > { %v2389_v22 = vadd.f32 %v4596_v16, %v2388_v20  ;;  %2908 = vmatprep.mubr.bf16.mxu0 %v3667_v11  ;;  %3197 = vmatprep.mubr.bf16.mxu1 %v3669_v14  ;;  %v3683_v14 = vcombine.high %v261_v60, %v265_v62  ;;  %v3685_v20 = vcombine.high %v262_v5, %v266_v6 }
 0x19d   : > { %v2390_v25 = vpop.f32.mrf.mxu0  ;;  %v2679_v32 = vpop.f32.mrf.mxu1 }
 0x19e   : > { %v4731_v30 = vadd.f32 %v2677_v23, %v2389_v22 }
 0x19f   : > { %v2391_v37 = vpop.f32.mrf.mxu0  ;;  %v2680_v42 = vpop.f32.mrf.mxu1 }
 0x1a0   : > { %v2392_v41 = vadd.f32 %v4596_v16, %v2391_v37 }
 0x1a1   : > { %v2393_v47 = vpop.f32.mrf.mxu0  ;;  %v2682_v52 = vpop.f32.mrf.mxu1 }
 0x1a2   : > { %v4736_v51 = vadd.f32 %v2680_v42, %v2392_v41  ;;  %v270_v41 = vld [vmem:[%s4211_s28 + $0x258] sm:$0xff]  ;;  %v3684_v52 = vcombine.low %v262_v5, %v266_v6 }
 0x1a3   : > { %v2396_v53 = vpop.f32.mrf.mxu0  ;;  %2909 = vmatmul.mubr.bf16.gmra.mxu0 %v3666_v39  ;;  %v2685_v58 = vpop.f32.mrf.mxu1  ;;  %3198 = vmatmul.mubr.bf16.gmra.mxu1 %v3668_v45  ;;  %v273_v39 = vld [vmem:[%s4211_s28 + $0x270] sm:$0xff]  ;;  %v274_v42 = vld [vmem:[%s4211_s28 + $0x278] sm:$0xff] }
 0x1a4   : > { %v2397_v55 = vadd.f32 %v4596_v16, %v2396_v53  ;;  %2916 = vmatprep.mubr.bf16.mxu0 %v3675_v46  ;;  %3205 = vmatprep.mubr.bf16.mxu1 %v3677_v48  ;;  %v3682_v46 = vcombine.low %v261_v60, %v265_v62  ;;  %v3691_v53 = vcombine.high %v269_v29, %v273_v39  ;;  %v277_v62 = vld [vmem:[%s4211_s28 + $0x290] sm:$0xff] }
 0x1a5   : > { %v2398_v59 = vpop.f32.mrf.mxu0  ;;  %v2687_v4 = vpop.f32.mrf.mxu1 }
 0x1a6   : > { %v4741_v0 = vadd.f32 %v2685_v58, %v2397_v55  ;;  %v3693_v58 = vcombine.high %v270_v41, %v274_v42 }
 0x1a7   : > { %v2399_v7 = vpop.f32.mrf.mxu0  ;;  %v2688_v11 = vpop.f32.mrf.mxu1 }
 0x1a8   : > { %v2400_v9 = vadd.f32 %v4596_v16, %v2399_v7 }
 0x1a9   : > { %v2401_v18 = vpop.f32.mrf.mxu0  ;;  %v2690_v23 = vpop.f32.mrf.mxu1 }
 0x1aa   : > { %v4746_v22 = vadd.f32 %v2688_v11, %v2400_v9  ;;  %v281_v11 = vld [vmem:[%s4211_s28 + $0x2b0] sm:$0xff] }
 0x1ab   : > { %v2404_v25 = vpop.f32.mrf.mxu0  ;;  %2917 = vmatmul.mubr.bf16.gmra.mxu0 %v3674_v8  ;;  %v2693_v37 = vpop.f32.mrf.mxu1  ;;  %3206 = vmatmul.mubr.bf16.gmra.mxu1 %v3676_v13  ;;  %v278_v13 = vld [vmem:[%s4211_s28 + $0x298] sm:$0xff] }
 0x1ac   : > { %v2405_v32 = vadd.f32 %v4596_v16, %v2404_v25  ;;  %2924 = vmatprep.mubr.bf16.mxu0 %v3683_v14  ;;  %3213 = vmatprep.mubr.bf16.mxu1 %v3685_v20  ;;  %v282_v14 = vld [vmem:[%s4211_s28 + $0x2b8] sm:$0xff]  ;;  %v3690_v20 = vcombine.low %v269_v29, %v273_v39  ;;  %v285_v39 = vld [vmem:[%s4211_s28 + $0x2d0] sm:$0xff] }
 0x1ad   : > { %v2406_v27 = vpop.f32.mrf.mxu0  ;;  %v2695_v35 = vpop.f32.mrf.mxu1 }
 0x1ae   : > { %v4751_v33 = vadd.f32 %v2693_v37, %v2405_v32  ;;  %v3692_v32 = vcombine.low %v270_v41, %v274_v42  ;;  %v3699_v37 = vcombine.high %v277_v62, %v281_v11  ;;  %v3701_v35 = vcombine.high %v278_v13, %v282_v14 }
 0x1af   : > { %v2407_v45 = vpop.f32.mrf.mxu0  ;;  %v2696_v48 = vpop.f32.mrf.mxu1 }
 0x1b0   : > { %v2408_v47 = vadd.f32 %v4596_v16, %v2407_v45 }
 0x1b1   : > { %v2409_v55 = vpop.f32.mrf.mxu0  ;;  %v2698_v4 = vpop.f32.mrf.mxu1 }
 0x1b2   : > { %v4756_v59 = vadd.f32 %v2696_v48, %v2408_v47  ;;  %v286_v55 = vld [vmem:[%s4211_s28 + $0x2d8] sm:$0xff] }
 0x1b3   : > { %v2412_v7 = vpop.f32.mrf.mxu0  ;;  %2925 = vmatmul.mubr.bf16.gmra.mxu0 %v3682_v46  ;;  %v2701_v9 = vpop.f32.mrf.mxu1  ;;  %3214 = vmatmul.mubr.bf16.gmra.mxu1 %v3684_v52 }
 0x1b4   : > { %v2413_v8 = vadd.f32 %v4596_v16, %v2412_v7  ;;  %2932 = vmatprep.mubr.bf16.mxu0 %v3691_v53  ;;  %3221 = vmatprep.mubr.bf16.mxu1 %v3693_v58  ;;  %v289_v53 = vld [vmem:[%s4211_s28 + $0x2f0] sm:$0xff]  ;;  %v290_v58 = vld [vmem:[%s4211_s28 + $0x2f8] sm:$0xff]  ;;  %v3698_v7 = vcombine.low %v277_v62, %v281_v11 }
 0x1b5   : > { %v2414_v60 = vpop.f32.mrf.mxu0  ;;  %v2703_v6 = vpop.f32.mrf.mxu1  ;;  %v293_v11 = vld [vmem:[%s4211_s28 + $0x310] sm:$0xff] }
 0x1b6   : > { %v4761_v5 = vadd.f32 %v2701_v9, %v2413_v8  ;;  %v3700_v60 = vcombine.low %v278_v13, %v282_v14  ;;  %v3707_v6 = vcombine.high %v285_v39, %v289_v53 }
 0x1b7   : > { %v2415_v18 = vpop.f32.mrf.mxu0  ;;  %v2704_v25 = vpop.f32.mrf.mxu1 }
 0x1b8   : > { %v2416_v23 = vadd.f32 %v4596_v16, %v2415_v18 }
 0x1b9   : > { %v2417_v27 = vpop.f32.mrf.mxu0  ;;  %v2706_v46 = vpop.f32.mrf.mxu1 }
 0x1ba   : > { %v4766_v45 = vadd.f32 %v2704_v25, %v2416_v23  ;;  %v294_v46 = vld [vmem:[%s4211_s28 + $0x318] sm:$0xff] }
 0x1bb   : > { %v2420_v47 = vpop.f32.mrf.mxu0  ;;  %2933 = vmatmul.mubr.bf16.gmra.mxu0 %v3690_v20  ;;  %v2709_v52 = vpop.f32.mrf.mxu1  ;;  %3222 = vmatmul.mubr.bf16.gmra.mxu1 %v3692_v32  ;;  %v3709_v20 = vcombine.high %v286_v55, %v290_v58 }
 0x1bc   : > { %v2421_v48 = vadd.f32 %v4596_v16, %v2420_v47  ;;  %2940 = vmatprep.mubr.bf16.mxu0 %v3699_v37  ;;  %3229 = vmatprep.mubr.bf16.mxu1 %v3701_v35  ;;  %v297_v35 = vld [vmem:[%s4211_s28 + $0x330] sm:$0xff]  ;;  %v298_v47 = vld [vmem:[%s4211_s28 + $0x338] sm:$0xff] }
 0x1bd   : > { %v2422_v29 = vpop.f32.mrf.mxu0  ;;  %v2711_v42 = vpop.f32.mrf.mxu1 }
 0x1be   : > { %v4771_v41 = vadd.f32 %v2709_v52, %v2421_v48  ;;  %v3706_v52 = vcombine.low %v285_v39, %v289_v53  ;;  %v301_v53 = vld [vmem:[%s4211_s28 + $0x350] sm:$0xff] }
 0x1bf   : > { %v2423_v4 = vpop.f32.mrf.mxu0  ;;  %v2712_v9 = vpop.f32.mrf.mxu1 }
 0x1c0   : > { %v2424_v8 = vadd.f32 %v4596_v16, %v2423_v4  ;;  %v3708_v4 = vcombine.low %v286_v55, %v290_v58 }
 0x1c1   : > { %v2425_v18 = vpop.f32.mrf.mxu0  ;;  %v2714_v25 = vpop.f32.mrf.mxu1 }
 0x1c2   : > { %v4776_v23 = vadd.f32 %v2712_v9, %v2424_v8  ;;  %v3717_v9 = vcombine.high %v294_v46, %v298_v47 }
 0x1c3   : > { %v2428_v32 = vpop.f32.mrf.mxu0  ;;  %2941 = vmatmul.mubr.bf16.gmra.mxu0 %v3698_v7  ;;  %v2717_v27 = vpop.f32.mrf.mxu1  ;;  %3230 = vmatmul.mubr.bf16.gmra.mxu1 %v3700_v60  ;;  %v3715_v7 = vcombine.high %v293_v11, %v297_v35 }
 0x1c4   : > { %v2429_v37 = vadd.f32 %v4596_v16, %v2428_v32  ;;  %2948 = vmatprep.mubr.bf16.mxu0 %v3707_v6  ;;  %3237 = vmatprep.mubr.bf16.mxu1 %v3709_v20  ;;  %v305_v32 = vld [vmem:[%s4211_s28 + $0x370] sm:$0xff] }
 0x1c5   : > { %v2430_v62 = vpop.f32.mrf.mxu0  ;;  %v2719_v14 = vpop.f32.mrf.mxu1 }
 0x1c6   : > { %v4781_v13 = vadd.f32 %v2717_v27, %v2429_v37  ;;  %v302_v37 = vld [vmem:[%s4211_s28 + $0x358] sm:$0xff]  ;;  %v3714_v14 = vcombine.low %v293_v11, %v297_v35  ;;  %v309_v35 = vld [vmem:[%s4211_s28 + $0x390] sm:$0xff] }
 0x1c7   : > { %v2431_v48 = vpop.f32.mrf.mxu0  ;;  %v2720_v42 = vpop.f32.mrf.mxu1  ;;  %v306_v27 = vld [vmem:[%s4211_s28 + $0x378] sm:$0xff] }
 0x1c8   : > { %v2432_v29 = vadd.f32 %v4596_v16, %v2431_v48 }
 0x1c9   : > { %v2433_v8 = vpop.f32.mrf.mxu0  ;;  %v2722_v6 = vpop.f32.mrf.mxu1 }
 0x1ca   : > { %v4786_v60 = vadd.f32 %v2720_v42, %v2432_v29  ;;  %v3716_v29 = vcombine.low %v294_v46, %v298_v47  ;;  %v3723_v42 = vcombine.high %v301_v53, %v305_v32 }
 0x1cb   : > { %v2436_v18 = vpop.f32.mrf.mxu0  ;;  %2949 = vmatmul.mubr.bf16.gmra.mxu0 %v3706_v52  ;;  %v2725_v25 = vpop.f32.mrf.mxu1  ;;  %3238 = vmatmul.mubr.bf16.gmra.mxu1 %v3708_v4 }
 0x1cc   : > { %v2437_v20 = vadd.f32 %v4596_v16, %v2436_v18  ;;  %2956 = vmatprep.mubr.bf16.mxu0 %v3715_v7  ;;  %3245 = vmatprep.mubr.bf16.mxu1 %v3717_v9  ;;  %v3725_v7 = vcombine.high %v302_v37, %v306_v27 }
 0x1cd   : > { %v2438_v39 = vpop.f32.mrf.mxu0  ;;  %v2727_v58 = vpop.f32.mrf.mxu1 }
 0x1ce   : > { %v4791_v55 = vadd.f32 %v2725_v25, %v2437_v20  ;;  %v313_v25 = vld [vmem:[%s4211_s28 + $0x3b0] sm:$0xff]  ;;  %v310_v39 = vld [vmem:[%s4211_s28 + $0x398] sm:$0xff] }
 0x1cf   : > { %v2439_v62 = vpop.f32.mrf.mxu0  ;;  %v2728_v52 = vpop.f32.mrf.mxu1  ;;  %v314_v58 = vld [vmem:[%s4211_s28 + $0x3b8] sm:$0xff] }
 0x1d0   : > { %v2440_v48 = vadd.f32 %v4596_v16, %v2439_v62 }
 0x1d1   : > { %v2441_v4 = vpop.f32.mrf.mxu0  ;;  %v2730_v9 = vpop.f32.mrf.mxu1 }
 0x1d2   : > { %v4796_v8 = vadd.f32 %v2728_v52, %v2440_v48  ;;  %v3722_v48 = vcombine.low %v301_v53, %v305_v32  ;;  %v3724_v4 = vcombine.low %v302_v37, %v306_v27  ;;  %v3731_v9 = vcombine.high %v309_v35, %v313_v25  ;;  %v317_v32 = vld [vmem:[%s4211_s28 + $0x3d0] sm:$0xff] }
 0x1d3   : > { %v2444_v6 = vpop.f32.mrf.mxu0  ;;  %2957 = vmatmul.mubr.bf16.gmra.mxu0 %v3714_v14  ;;  %v2733_v20 = vpop.f32.mrf.mxu1  ;;  %3246 = vmatmul.mubr.bf16.gmra.mxu1 %v3716_v29 }
 0x1d4   : > { %v2445_v18 = vadd.f32 %v4596_v16, %v2444_v6  ;;  %2964 = vmatprep.mubr.bf16.mxu0 %v3723_v42  ;;  %3253 = vmatprep.mubr.bf16.mxu1 %v3725_v7  ;;  %v3733_v42 = vcombine.high %v310_v39, %v314_v58 }
 0x1d5   : > { %v2446_v11 = vpop.f32.mrf.mxu0  ;;  %v2735_v47 = vpop.f32.mrf.mxu1 }
 0x1d6   : > { %v4801_v46 = vadd.f32 %v2733_v20, %v2445_v18  ;;  %v321_v47 = vld [vmem:[%s4211_s28 + $0x3f0] sm:$0xff] }
 0x1d7   : > { %v2447_v62 = vpop.f32.mrf.mxu0  ;;  %v2736_v14 = vpop.f32.mrf.mxu1 }
 0x1d8   : > { %5105 = vst [vmem:[#allocation5_spill] sm:$0xff] %v4801_v46  ;;  %v2448_v52 = vadd.f32 %v4596_v16, %v2447_v62  ;;  %v318_v62 = vld [vmem:[%s4211_s28 + $0x3d8] sm:$0xff] }
 0x1d9   : > { %v2449_v29 = vpop.f32.mrf.mxu0  ;;  %v2738_v6 = vpop.f32.mrf.mxu1 }
 0x1da   : > { %v4806_v7 = vadd.f32 %v2736_v14, %v2448_v52  ;;  %v322_v29 = vld [vmem:[%s4211_s28 + $0x3f8] sm:$0xff]  ;;  %v3730_v52 = vcombine.low %v309_v35, %v313_v25 }
 0x1db   : > { %v2452_v18 = vpop.f32.mrf.mxu0  ;;  %2965 = vmatmul.mubr.bf16.gmra.mxu0 %v3722_v48  ;;  %v2741_v11 = vpop.f32.mrf.mxu1  ;;  %3254 = vmatmul.mubr.bf16.gmra.mxu1 %v3724_v4  ;;  %v4818_v48 = vld [vmem:[%s5098_s2] ss:$0 sm:$0xff]  ;;  %v3732_v4 = vcombine.low %v310_v39, %v314_v58  ;;  %v3741_v6 = vcombine.high %v318_v62, %v322_v29 }
 0x1dc   : > { %5106 = vst [vmem:[#allocation6_spill] sm:$0xff] %v4806_v7  ;;  %v2453_v20 = vadd.f32 %v4596_v16, %v2452_v18  ;;  %2972 = vmatprep.mubr.bf16.mxu0 %v3731_v9  ;;  %3261 = vmatprep.mubr.bf16.mxu1 %v3733_v42  ;;  %v3739_v9 = vcombine.high %v317_v32, %v321_v47 }
 0x1dd   : > { %v2454_v53 = vpop.f32.mrf.mxu0  ;;  %v2743_v27 = vpop.f32.mrf.mxu1 }
 0x1de   : > { %v4811_v37 = vadd.f32 %v2741_v11, %v2453_v20  ;;  %v325_v53 = vld [vmem:[%s4211_s28 + $0x410] sm:$0xff] }
 0x1df   : > { %v2455_v46 = vpop.f32.mrf.mxu0  ;;  %v2744_v14 = vpop.f32.mrf.mxu1  ;;  %v329_v27 = vld [vmem:[%s4211_s28 + $0x430] sm:$0xff] }
 0x1e0   : > { %5107 = vst [vmem:[#allocation7_spill] sm:$0xff] %v4811_v37  ;;  %v2456_v16 = vadd.f32 %v4818_v48, %v2455_v46  ;;  %v330_v37 = vld [vmem:[%s4211_s28 + $0x438] sm:$0xff] }
 0x1e1   : > { %v2457_v42 = vpop.f32.mrf.mxu0  ;;  %v2746_v20 = vpop.f32.mrf.mxu1 }
 0x1e2   : > { %v4821_v18 = vadd.f32 %v2744_v14, %v2456_v16  ;;  %v326_v42 = vld [vmem:[%s4211_s28 + $0x418] sm:$0xff]  ;;  %v3738_v16 = vcombine.low %v317_v32, %v321_v47  ;;  %v3740_v20 = vcombine.low %v318_v62, %v322_v29  ;;  %v333_v32 = vld [vmem:[%s4211_s28 + $0x450] sm:$0xff] }
 0x1e3   : > { %v2460_v35 = vpop.f32.mrf.mxu0  ;;  %2973 = vmatmul.mubr.bf16.gmra.mxu0 %v3730_v52  ;;  %v2749_v11 = vpop.f32.mrf.mxu1  ;;  %3262 = vmatmul.mubr.bf16.gmra.mxu1 %v3732_v4  ;;  %v337_v47 = vld [vmem:[%s4211_s28 + $0x470] sm:$0xff] }
 0x1e4   : > { %5108 = vst [vmem:[#allocation8_spill] sm:$0xff] %v4821_v18  ;;  %v2461_v25 = vadd.f32 %v4818_v48, %v2460_v35  ;;  %2980 = vmatprep.mubr.bf16.mxu0 %v3739_v9  ;;  %3269 = vmatprep.mubr.bf16.mxu1 %v3741_v6  ;;  %v3747_v35 = vcombine.high %v325_v53, %v329_v27 }
 0x1e5   : > { %v2462_v46 = vpop.f32.mrf.mxu0  ;;  %v2751_v58 = vpop.f32.mrf.mxu1  ;;  %v3749_v9 = vcombine.high %v326_v42, %v330_v37 }
 0x1e6   : > { %v4826_v39 = vadd.f32 %v2749_v11, %v2461_v25 }
 0x1e7   : > { %v2463_v7 = vpop.f32.mrf.mxu0  ;;  %v2752_v52 = vpop.f32.mrf.mxu1 }
 0x1e8   : > { %5109 = vst [vmem:[#allocation9_spill] sm:$0xff] %v4826_v39  ;;  %v2464_v14 = vadd.f32 %v4818_v48, %v2463_v7  ;;  %v338_v39 = vld [vmem:[%s4211_s28 + $0x478] sm:$0xff] }
 0x1e9   : > { %v2465_v4 = vpop.f32.mrf.mxu0  ;;  %v2754_v25 = vpop.f32.mrf.mxu1 }
 0x1ea   : > { %v4831_v6 = vadd.f32 %v2752_v52, %v2464_v14  ;;  %v334_v4 = vld [vmem:[%s4211_s28 + $0x458] sm:$0xff]  ;;  %v3746_v14 = vcombine.low %v325_v53, %v329_v27  ;;  %v3748_v25 = vcombine.low %v326_v42, %v330_v37  ;;  %v341_v53 = vld [vmem:[%s4211_s28 + $0x490] sm:$0xff] }
 0x1eb   : > { %v2468_v11 = vpop.f32.mrf.mxu0  ;;  %2981 = vmatmul.mubr.bf16.gmra.mxu0 %v3738_v16  ;;  %v2757_v58 = vpop.f32.mrf.mxu1  ;;  %3270 = vmatmul.mubr.bf16.gmra.mxu1 %v3740_v20  ;;  %v345_v27 = vld [vmem:[%s4211_s28 + $0x4b0] sm:$0xff] }
 0x1ec   : > { %5110 = vst [vmem:[#allocation10_spill] sm:$0xff] %v4831_v6  ;;  %v2469_v46 = vadd.f32 %v4818_v48, %v2468_v11  ;;  %2988 = vmatprep.mubr.bf16.mxu0 %v3747_v35  ;;  %3277 = vmatprep.mubr.bf16.mxu1 %v3749_v9  ;;  %v3755_v11 = vcombine.high %v333_v32, %v337_v47 }
 0x1ed   : > { %v2470_v7 = vpop.f32.mrf.mxu0  ;;  %v2759_v29 = vpop.f32.mrf.mxu1  ;;  %v3757_v35 = vcombine.high %v334_v4, %v338_v39 }
 0x1ee   : > { %v4836_v62 = vadd.f32 %v2757_v58, %v2469_v46 }
 0x1ef   : > { %v2471_v18 = vpop.f32.mrf.mxu0  ;;  %v2760_v16 = vpop.f32.mrf.mxu1 }
 0x1f0   : > { %5111 = vst [vmem:[#allocation11_spill] sm:$0xff] %v4836_v62  ;;  %v2472_v52 = vadd.f32 %v4818_v48, %v2471_v18  ;;  %v346_v62 = vld [vmem:[%s4211_s28 + $0x4b8] sm:$0xff] }
 0x1f1   : > { %v2473_v20 = vpop.f32.mrf.mxu0  ;;  %v2762_v46 = vpop.f32.mrf.mxu1 }
 0x1f2   : > { %v4841_v9 = vadd.f32 %v2760_v16, %v2472_v52  ;;  %v342_v20 = vld [vmem:[%s4211_s28 + $0x498] sm:$0xff]  ;;  %v3754_v52 = vcombine.low %v333_v32, %v337_v47  ;;  %v3756_v46 = vcombine.low %v334_v4, %v338_v39  ;;  %v349_v32 = vld [vmem:[%s4211_s28 + $0x4d0] sm:$0xff] }
 0x1f3   : > { %v2476_v58 = vpop.f32.mrf.mxu0  ;;  %2989 = vmatmul.mubr.bf16.gmra.mxu0 %v3746_v14  ;;  %v2765_v29 = vpop.f32.mrf.mxu1  ;;  %3278 = vmatmul.mubr.bf16.gmra.mxu1 %v3748_v25  ;;  %v353_v47 = vld [vmem:[%s4211_s28 + $0x4f0] sm:$0xff] }
 0x1f4   : > { %5112 = vst [vmem:[#allocation12_spill] sm:$0xff] %v4841_v9  ;;  %v2477_v7 = vadd.f32 %v4818_v48, %v2476_v58  ;;  %2996 = vmatprep.mubr.bf16.mxu0 %v3755_v11  ;;  %3285 = vmatprep.mubr.bf16.mxu1 %v3757_v35  ;;  %v3763_v58 = vcombine.high %v341_v53, %v345_v27 }
 0x1f5   : > { %v2478_v18 = vpop.f32.mrf.mxu0  ;;  %v2767_v42 = vpop.f32.mrf.mxu1  ;;  %v3765_v11 = vcombine.high %v342_v20, %v346_v62 }
 0x1f6   : > { %v4846_v37 = vadd.f32 %v2765_v29, %v2477_v7 }
 0x1f7   : > { %v2479_v6 = vpop.f32.mrf.mxu0  ;;  %v2768_v14 = vpop.f32.mrf.mxu1 }
 0x1f8   : > { %5113 = vst [vmem:[#allocation13_spill] sm:$0xff] %v4846_v37  ;;  %v2480_v16 = vadd.f32 %v4818_v48, %v2479_v6  ;;  %v354_v37 = vld [vmem:[%s4211_s28 + $0x4f8] sm:$0xff] }
 0x1f9   : > { %v2481_v25 = vpop.f32.mrf.mxu0  ;;  %v2770_v7 = vpop.f32.mrf.mxu1 }
 0x1fa   : > { %v4851_v35 = vadd.f32 %v2768_v14, %v2480_v16  ;;  %v350_v25 = vld [vmem:[%s4211_s28 + $0x4d8] sm:$0xff]  ;;  %v3762_v16 = vcombine.low %v341_v53, %v345_v27  ;;  %v3764_v7 = vcombine.low %v342_v20, %v346_v62  ;;  %v357_v53 = vld [vmem:[%s4211_s28 + $0x510] sm:$0xff] }
 0x1fb   : > { %v2484_v29 = vpop.f32.mrf.mxu0  ;;  %2997 = vmatmul.mubr.bf16.gmra.mxu0 %v3754_v52  ;;  %v2773_v42 = vpop.f32.mrf.mxu1  ;;  %3286 = vmatmul.mubr.bf16.gmra.mxu1 %v3756_v46  ;;  %v361_v27 = vld [vmem:[%s4211_s28 + $0x530] sm:$0xff] }
 0x1fc   : > { %5114 = vst [vmem:[#allocation14_spill] sm:$0xff] %v4851_v35  ;;  %v2485_v18 = vadd.f32 %v4818_v48, %v2484_v29  ;;  %3004 = vmatprep.mubr.bf16.mxu0 %v3763_v58  ;;  %3293 = vmatprep.mubr.bf16.mxu1 %v3765_v11  ;;  %v3771_v29 = vcombine.high %v349_v32, %v353_v47 }
 0x1fd   : > { %v2486_v6 = vpop.f32.mrf.mxu0  ;;  %v2775_v4 = vpop.f32.mrf.mxu1  ;;  %v3773_v58 = vcombine.high %v350_v25, %v354_v37 }
 0x1fe   : > { %v4856_v39 = vadd.f32 %v2773_v42, %v2485_v18 }
 0x1ff   : > { %v2487_v9 = vpop.f32.mrf.mxu0  ;;  %v2776_v52 = vpop.f32.mrf.mxu1 }
 0x200   : > { %5115 = vst [vmem:[#allocation15_spill] sm:$0xff] %v4856_v39  ;;  %v2488_v14 = vadd.f32 %v4818_v48, %v2487_v9  ;;  %v362_v39 = vld [vmem:[%s4211_s28 + $0x538] sm:$0xff] }
 0x201   : > { %v2489_v46 = vpop.f32.mrf.mxu0  ;;  %v2778_v18 = vpop.f32.mrf.mxu1 }
 0x202   : > { %v4861_v11 = vadd.f32 %v2776_v52, %v2488_v14  ;;  %v358_v46 = vld [vmem:[%s4211_s28 + $0x518] sm:$0xff]  ;;  %v3770_v14 = vcombine.low %v349_v32, %v353_v47  ;;  %v3772_v18 = vcombine.low %v350_v25, %v354_v37  ;;  %v365_v32 = vld [vmem:[%s4211_s28 + $0x550] sm:$0xff] }
 0x203   : > { %v2492_v42 = vpop.f32.mrf.mxu0  ;;  %3005 = vmatmul.mubr.bf16.gmra.mxu0 %v3762_v16  ;;  %v2781_v4 = vpop.f32.mrf.mxu1  ;;  %3294 = vmatmul.mubr.bf16.gmra.mxu1 %v3764_v7  ;;  %v369_v47 = vld [vmem:[%s4211_s28 + $0x570] sm:$0xff] }
 0x204   : > { %5116 = vst [vmem:[#allocation16_spill] sm:$0xff] %v4861_v11  ;;  %v2493_v6 = vadd.f32 %v4818_v48, %v2492_v42  ;;  %3012 = vmatprep.mubr.bf16.mxu0 %v3771_v29  ;;  %3301 = vmatprep.mubr.bf16.mxu1 %v3773_v58  ;;  %v3779_v42 = vcombine.high %v357_v53, %v361_v27 }
 0x205   : > { %v2494_v9 = vpop.f32.mrf.mxu0  ;;  %v2783_v20 = vpop.f32.mrf.mxu1  ;;  %v3781_v29 = vcombine.high %v358_v46, %v362_v39 }
 0x206   : > { %v4866_v62 = vadd.f32 %v2781_v4, %v2493_v6 }
 0x207   : > { %v2495_v35 = vpop.f32.mrf.mxu0  ;;  %v2784_v16 = vpop.f32.mrf.mxu1 }
 0x208   : > { %5117 = vst [vmem:[#allocation17_spill] sm:$0xff] %v4866_v62  ;;  %v2496_v52 = vadd.f32 %v4818_v48, %v2495_v35  ;;  %v370_v62 = vld [vmem:[%s4211_s28 + $0x578] sm:$0xff] }
 0x209   : > { %v2497_v7 = vpop.f32.mrf.mxu0  ;;  %v2786_v6 = vpop.f32.mrf.mxu1 }
 0x20a   : > { %v4871_v58 = vadd.f32 %v2784_v16, %v2496_v52  ;;  %v366_v7 = vld [vmem:[%s4211_s28 + $0x558] sm:$0xff]  ;;  %v3778_v52 = vcombine.low %v357_v53, %v361_v27  ;;  %v3780_v6 = vcombine.low %v358_v46, %v362_v39  ;;  %v373_v53 = vld [vmem:[%s4211_s28 + $0x590] sm:$0xff] }
 0x20b   : > { %v2500_v4 = vpop.f32.mrf.mxu0  ;;  %3013 = vmatmul.mubr.bf16.gmra.mxu0 %v3770_v14  ;;  %v2789_v20 = vpop.f32.mrf.mxu1  ;;  %3302 = vmatmul.mubr.bf16.gmra.mxu1 %v3772_v18  ;;  %v377_v27 = vld [vmem:[%s4211_s28 + $0x5b0] sm:$0xff] }
 0x20c   : > { %5118 = vst [vmem:[#allocation18_spill] sm:$0xff] %v4871_v58  ;;  %v2501_v9 = vadd.f32 %v4818_v48, %v2500_v4  ;;  %3020 = vmatprep.mubr.bf16.mxu0 %v3779_v42  ;;  %3309 = vmatprep.mubr.bf16.mxu1 %v3781_v29  ;;  %v3787_v4 = vcombine.high %v365_v32, %v369_v47 }
 0x20d   : > { %v2502_v35 = vpop.f32.mrf.mxu0  ;;  %v2791_v25 = vpop.f32.mrf.mxu1  ;;  %v3789_v42 = vcombine.high %v366_v7, %v370_v62 }
 0x20e   : > { %v4876_v37 = vadd.f32 %v2789_v20, %v2501_v9 }
 0x20f   : > { %v2503_v11 = vpop.f32.mrf.mxu0  ;;  %v2792_v14 = vpop.f32.mrf.mxu1 }
 0x210   : > { %5119 = vst [vmem:[#allocation19_spill] sm:$0xff] %v4876_v37  ;;  %v2504_v16 = vadd.f32 %v4818_v48, %v2503_v11  ;;  %v378_v37 = vld [vmem:[%s4211_s28 + $0x5b8] sm:$0xff] }
 0x211   : > { %v2505_v18 = vpop.f32.mrf.mxu0  ;;  %v2794_v9 = vpop.f32.mrf.mxu1 }
 0x212   : > { %v4881_v29 = vadd.f32 %v2792_v14, %v2504_v16  ;;  %v374_v18 = vld [vmem:[%s4211_s28 + $0x598] sm:$0xff]  ;;  %v3786_v16 = vcombine.low %v365_v32, %v369_v47  ;;  %v3788_v9 = vcombine.low %v366_v7, %v370_v62  ;;  %v381_v32 = vld [vmem:[%s4211_s28 + $0x5d0] sm:$0xff] }
 0x213   : > { %v2508_v20 = vpop.f32.mrf.mxu0  ;;  %3021 = vmatmul.mubr.bf16.gmra.mxu0 %v3778_v52  ;;  %v2797_v25 = vpop.f32.mrf.mxu1  ;;  %3310 = vmatmul.mubr.bf16.gmra.mxu1 %v3780_v6  ;;  %v385_v47 = vld [vmem:[%s4211_s28 + $0x5f0] sm:$0xff] }
 0x214   : > { %5120 = vst [vmem:[#allocation20_spill] sm:$0xff] %v4881_v29  ;;  %v2509_v35 = vadd.f32 %v4818_v48, %v2508_v20  ;;  %3028 = vmatprep.mubr.bf16.mxu0 %v3787_v4  ;;  %3317 = vmatprep.mubr.bf16.mxu1 %v3789_v42  ;;  %v3795_v20 = vcombine.high %v373_v53, %v377_v27 }
 0x215   : > { %v2510_v11 = vpop.f32.mrf.mxu0  ;;  %v2799_v46 = vpop.f32.mrf.mxu1  ;;  %v3797_v4 = vcombine.high %v374_v18, %v378_v37 }
 0x216   : > { %v4886_v39 = vadd.f32 %v2797_v25, %v2509_v35 }
 0x217   : > { %v2511_v58 = vpop.f32.mrf.mxu0  ;;  %v2800_v52 = vpop.f32.mrf.mxu1 }
 0x218   : > { %5121 = vst [vmem:[#allocation21_spill] sm:$0xff] %v4886_v39  ;;  %v2512_v14 = vadd.f32 %v4818_v48, %v2511_v58  ;;  %v386_v39 = vld [vmem:[%s4211_s28 + $0x5f8] sm:$0xff] }
 0x219   : > { %v2513_v6 = vpop.f32.mrf.mxu0  ;;  %v2802_v35 = vpop.f32.mrf.mxu1 }
 0x21a   : > { %v4891_v42 = vadd.f32 %v2800_v52, %v2512_v14  ;;  %v382_v6 = vld [vmem:[%s4211_s28 + $0x5d8] sm:$0xff]  ;;  %v3794_v14 = vcombine.low %v373_v53, %v377_v27  ;;  %v3796_v35 = vcombine.low %v374_v18, %v378_v37  ;;  %v389_v53 = vld [vmem:[%s4211_s28 + $0x610] sm:$0xff] }
 0x21b   : > { %v2516_v25 = vpop.f32.mrf.mxu0  ;;  %3029 = vmatmul.mubr.bf16.gmra.mxu0 %v3786_v16  ;;  %v2805_v46 = vpop.f32.mrf.mxu1  ;;  %3318 = vmatmul.mubr.bf16.gmra.mxu1 %v3788_v9  ;;  %v393_v37 = vld [vmem:[%s4211_s28 + $0x630] sm:$0xff] }
 0x21c   : > { %v2517_v11 = vadd.f32 %v4818_v48, %v2516_v25  ;;  %3036 = vmatprep.mubr.bf16.mxu0 %v3795_v20  ;;  %3325 = vmatprep.mubr.bf16.mxu1 %v3797_v4  ;;  %v3803_v25 = vcombine.high %v381_v32, %v385_v47  ;;  %v3805_v20 = vcombine.high %v382_v6, %v386_v39 }
 0x21d   : > { %v2518_v58 = vpop.f32.mrf.mxu0  ;;  %v2807_v7 = vpop.f32.mrf.mxu1 }
 0x21e   : > { %v4896_v62 = vadd.f32 %v2805_v46, %v2517_v11 }
 0x21f   : > { %v2519_v29 = vpop.f32.mrf.mxu0  ;;  %v2808_v16 = vpop.f32.mrf.mxu1 }
 0x220   : > { %5122 = vst [vmem:[#allocation22_spill] sm:$0xff] %v4896_v62  ;;  %v2520_v52 = vadd.f32 %v4818_v48, %v2519_v29  ;;  %v394_v62 = vld [vmem:[%s4211_s28 + $0x638] sm:$0xff] }
 0x221   : > { %v2521_v9 = vpop.f32.mrf.mxu0  ;;  %v2810_v11 = vpop.f32.mrf.mxu1 }
 0x222   : > { %v4901_v4 = vadd.f32 %v2808_v16, %v2520_v52  ;;  %v390_v9 = vld [vmem:[%s4211_s28 + $0x618] sm:$0xff]  ;;  %v3802_v16 = vcombine.low %v381_v32, %v385_v47 }
 0x223   : > { %v2524_v46 = vpop.f32.mrf.mxu0  ;;  %3037 = vmatmul.mubr.bf16.gmra.mxu0 %v3794_v14  ;;  %v2813_v7 = vpop.f32.mrf.mxu1  ;;  %3326 = vmatmul.mubr.bf16.gmra.mxu1 %v3796_v35 }
 0x224   : > { %5123 = vst [vmem:[#allocation23_spill] sm:$0xff] %v4901_v4  ;;  %v2525_v58 = vadd.f32 %v4818_v48, %v2524_v46  ;;  %3044 = vmatprep.mubr.bf16.mxu0 %v3803_v25  ;;  %3333 = vmatprep.mubr.bf16.mxu1 %v3805_v20  ;;  %v3804_v4 = vcombine.low %v382_v6, %v386_v39  ;;  %v397_v6 = vld [vmem:[%s4211_s28 + $0x650] sm:$0xff] }
 0x225   : > { %v2526_v29 = vpop.f32.mrf.mxu0  ;;  %v2815_v18 = vpop.f32.mrf.mxu1  ;;  %v3811_v46 = vcombine.high %v389_v53, %v393_v37  ;;  %v3813_v25 = vcombine.high %v390_v9, %v394_v62 }
 0x226   : > { %v4906_v27 = vadd.f32 %v2813_v7, %v2525_v58  ;;  %v401_v29 = vld [vmem:[%s4211_s28 + $0x670] sm:$0xff] }
 0x227   : > { %v2527_v52 = vpop.f32.mrf.mxu0  ;;  %v2816_v14 = vpop.f32.mrf.mxu1 }
 0x228   : > { %5124 = vst [vmem:[#allocation24_spill] sm:$0xff] %v4906_v27  ;;  %v2528_v11 = vadd.f32 %v4818_v48, %v2527_v52  ;;  %v3812_v27 = vcombine.low %v390_v9, %v394_v62  ;;  %v409_v9 = vld [vmem:[%s4211_s28 + $0x6b0] sm:$0xff] }
 0x229   : > { %v2529_v35 = vpop.f32.mrf.mxu0  ;;  %v2818_v58 = vpop.f32.mrf.mxu1 }
 0x22a   : > { %v4913_v20 = vadd.f32 %v2816_v14, %v2528_v11  ;;  %v398_v35 = vld [vmem:[%s4211_s28 + $0x658] sm:$0xff] }
 0x22b   : > { %v2532_v7 = vpop.f32.mrf.mxu0  ;;  %3045 = vmatmul.mubr.bf16.gmra.mxu0 %v3802_v16  ;;  %v2821_v47 = vpop.f32.mrf.mxu1  ;;  %3334 = vmatmul.mubr.bf16.gmra.mxu1 %v3804_v4  ;;  %v402_v11 = vld [vmem:[%s4211_s28 + $0x678] sm:$0xff]  ;;  %v3819_v4 = vcombine.high %v397_v6, %v401_v29 }
 0x22c   : > { %5125 = vst [vmem:[#allocation25_spill] sm:$0xff] %v4913_v20  ;;  %v2533_v32 = vadd.f32 %v4818_v48, %v2532_v7  ;;  %3052 = vmatprep.mubr.bf16.mxu0 %v3811_v46  ;;  %3341 = vmatprep.mubr.bf16.mxu1 %v3813_v25  ;;  %v3810_v20 = vcombine.low %v389_v53, %v393_v37  ;;  %v405_v37 = vld [vmem:[%s4211_s28 + $0x690] sm:$0xff] }
 0x22d   : > { %v2534_v39 = vpop.f32.mrf.mxu0  ;;  %v2823_v52 = vpop.f32.mrf.mxu1  ;;  %v3821_v25 = vcombine.high %v398_v35, %v402_v11 }
 0x22e   : > { %v4918_v18 = vadd.f32 %v2821_v47, %v2533_v32 }
 0x22f   : > { %v2535_v14 = vpop.f32.mrf.mxu0  ;;  %v2824_v16 = vpop.f32.mrf.mxu1 }
 0x230   : > { %v2536_v58 = vadd.f32 %v4818_v48, %v2535_v14  ;;  %v406_v14 = vld [vmem:[%s4211_s28 + $0x698] sm:$0xff] }
 0x231   : > { %v2537_v46 = vpop.f32.mrf.mxu0  ;;  %v2826_v32 = vpop.f32.mrf.mxu1 }
 0x232   : > { %v4924_v7 = vadd.f32 %v2824_v16, %v2536_v58  ;;  %v410_v46 = vld [vmem:[%s4211_s28 + $0x6b8] sm:$0xff] }
 0x233   : > { %v2862_v47 = vpop.f32.mrf.mxu0  ;;  %3053 = vmatmul.mubr.bf16.gmra.mxu0 %v3810_v20  ;;  %v3151_v48 = vpop.f32.mrf.mxu1  ;;  %3342 = vmatmul.mubr.bf16.gmra.mxu1 %v3812_v27 }
 0x234   : > { %v2863_v53 = vadd.f32 %v2862_v47, %v4601_v24  ;;  %3060 = vmatprep.mubr.bf16.mxu0 %v3819_v4  ;;  %3349 = vmatprep.mubr.bf16.mxu1 %v3821_v25  ;;  %v3818_v24 = vcombine.low %v397_v6, %v401_v29  ;;  %v3820_v4 = vcombine.low %v398_v35, %v402_v11  ;;  %v413_v35 = vld [vmem:[%s4211_s28 + $0x6d0] sm:$0xff] }
 0x235   : > { %v2864_v62 = vpop.f32.mrf.mxu0  ;;  %v3153_v52 = vpop.f32.mrf.mxu1  ;;  %v3827_v25 = vcombine.high %v405_v37, %v409_v9  ;;  %v3829_v47 = vcombine.high %v406_v14, %v410_v46  ;;  %v417_v11 = vld [vmem:[%s4211_s28 + $0x6f0] sm:$0xff] }
 0x236   : > { %v3152_v39 = vadd.f32 %v3151_v48, %v2863_v53 }
 0x237   : > { %v2865_v20 = vpop.f32.mrf.mxu0  ;;  %v3154_v16 = vpop.f32.mrf.mxu1 }
 0x238   : > { %v3406_v58 = vmax.f32 %v3152_v39, 0.0  ;;  %v2866_v27 = vadd.f32 %v2865_v20, %v4606_v36 }
 0x239   : > { %v2867_v32 = vpop.f32.mrf.mxu0  ;;  %v3156_v48 = vpop.f32.mrf.mxu1 }
 0x23a   : > { %3470 = vst [vmem:[%s4934_s19] sm:$0xff] %v3406_v58  ;;  %v3155_v53 = vadd.f32 %v3154_v16, %v2866_v27  ;;  %v414_v58 = vld [vmem:[%s4211_s28 + $0x6d8] sm:$0xff]  ;;  %v3826_v32 = vcombine.low %v405_v37, %v409_v9 }
 0x23b   : > { %v2870_v62 = vpop.f32.mrf.mxu0  ;;  %3061 = vmatmul.mubr.bf16.gmra.mxu0 %v3818_v24  ;;  %v3159_v29 = vpop.f32.mrf.mxu1  ;;  %3350 = vmatmul.mubr.bf16.gmra.mxu1 %v3820_v4  ;;  %v418_v27 = vld [vmem:[%s4211_s28 + $0x6f8] sm:$0xff]  ;;  %v3835_v4 = vcombine.high %v413_v35, %v417_v11 }
 0x23c   : > { %v3407_v52 = vmax.f32 %v3155_v53, 0.0  ;;  %v2871_v6 = vadd.f32 %v2870_v62, %v4611_v44  ;;  %3068 = vmatprep.mubr.bf16.mxu0 %v3827_v25  ;;  %3357 = vmatprep.mubr.bf16.mxu1 %v3829_v47  ;;  %v3828_v44 = vcombine.low %v406_v14, %v410_v46  ;;  %v3837_v47 = vcombine.high %v414_v58, %v418_v27  ;;  %v421_v14 = vld [vmem:[%s4211_s28 + $0x710] sm:$0xff] }
 0x23d   : > { %v2872_v36 = vpop.f32.mrf.mxu0  ;;  %v3161_v20 = vpop.f32.mrf.mxu1  ;;  %v425_v46 = vld [vmem:[%s4211_s28 + $0x730] sm:$0xff] }
 0x23e   : > { %3471 = vst [vmem:[%s4934_s19 + $0x8] sm:$0xff] %v3407_v52  ;;  %v3160_v39 = vadd.f32 %v3159_v29, %v2871_v6  ;;  %v422_v20 = vld [vmem:[%s4211_s28 + $0x718] sm:$0xff] }
 0x23f   : > { %v2873_v16 = vpop.f32.mrf.mxu0  ;;  %v3162_v53 = vpop.f32.mrf.mxu1 }
 0x240   : > { %v3408_v48 = vmax.f32 %v3160_v39, 0.0  ;;  %v2874_v24 = vadd.f32 %v2873_v16, %v4616_v56  ;;  %v426_v16 = vld [vmem:[%s4211_s28 + $0x738] sm:$0xff] }
 0x241   : > { %v2875_v25 = vpop.f32.mrf.mxu0  ;;  %v3164_v52 = vpop.f32.mrf.mxu1 }
 0x242   : > { %3472 = vst [vmem:[%s4934_s19 + $0x10] sm:$0xff] %v3408_v48  ;;  %v3163_v62 = vadd.f32 %v3162_v53, %v2874_v24  ;;  %v3834_v24 = vcombine.low %v413_v35, %v417_v11 }
 0x243   : > { %v2878_v6 = vpop.f32.mrf.mxu0  ;;  %3069 = vmatmul.mubr.bf16.gmra.mxu0 %v3826_v32  ;;  %v3167_v9 = vpop.f32.mrf.mxu1  ;;  %3358 = vmatmul.mubr.bf16.gmra.mxu1 %v3828_v44  ;;  %v3843_v44 = vcombine.high %v421_v14, %v425_v46 }
 0x244   : > { %v3409_v29 = vmax.f32 %v3163_v62, 0.0  ;;  %v2879_v37 = vadd.f32 %v2878_v6, %v4621_v63  ;;  %3076 = vmatprep.mubr.bf16.mxu0 %v3835_v4  ;;  %3365 = vmatprep.mubr.bf16.mxu1 %v3837_v47  ;;  %v3836_v63 = vcombine.low %v414_v58, %v418_v27  ;;  %v3845_v47 = vcombine.high %v422_v20, %v426_v16  ;;  %v429_v58 = vld [vmem:[%s4211_s28 + $0x750] sm:$0xff] }
 0x245   : > { %v2880_v56 = vpop.f32.mrf.mxu0  ;;  %v3169_v39 = vpop.f32.mrf.mxu1  ;;  %v433_v27 = vld [vmem:[%s4211_s28 + $0x770] sm:$0xff] }
 0x246   : > { %3473 = vst [vmem:[%s4934_s19 + $0x18] sm:$0xff] %v3409_v29  ;;  %v3168_v36 = vadd.f32 %v3167_v9, %v2879_v37  ;;  %v430_v56 = vld [vmem:[%s4211_s28 + $0x758] sm:$0xff] }
 0x247   : > { %v2881_v48 = vpop.f32.mrf.mxu0  ;;  %v3170_v25 = vpop.f32.mrf.mxu1 }
 0x248   : > { %v3410_v53 = vmax.f32 %v3168_v36, 0.0  ;;  %v2882_v32 = vadd.f32 %v2881_v48, %v4626_v12  ;;  %v434_v36 = vld [vmem:[%s4211_s28 + $0x778] sm:$0xff]  ;;  %v3842_v48 = vcombine.low %v421_v14, %v425_v46 }
 0x249   : > { %v2883_v4 = vpop.f32.mrf.mxu0  ;;  %v3172_v52 = vpop.f32.mrf.mxu1 }
 0x24a   : > { %3474 = vst [vmem:[%s4934_s19 + $0x20] sm:$0xff] %v3410_v53  ;;  %v3171_v62 = vadd.f32 %v3170_v25, %v2882_v32  ;;  %v3851_v25 = vcombine.high %v429_v58, %v433_v27 }
 0x24b   : > { %v2886_v6 = vpop.f32.mrf.mxu0  ;;  %3077 = vmatmul.mubr.bf16.gmra.mxu0 %v3834_v24  ;;  %v3175_v11 = vpop.f32.mrf.mxu1  ;;  %3366 = vmatmul.mubr.bf16.gmra.mxu1 %v3836_v63 }
 0x24c   : > { %v3411_v29 = vmax.f32 %v3171_v62, 0.0  ;;  %v2887_v35 = vadd.f32 %v2886_v6, %v4631_v21  ;;  %3084 = vmatprep.mubr.bf16.mxu0 %v3843_v44  ;;  %3373 = vmatprep.mubr.bf16.mxu1 %v3845_v47  ;;  %v3844_v21 = vcombine.low %v422_v20, %v426_v16  ;;  %v3853_v44 = vcombine.high %v430_v56, %v434_v36  ;;  %v437_v20 = vld [vmem:[%s4211_s28 + $0x790] sm:$0xff] }
 0x24d   : > { %v2888_v12 = vpop.f32.mrf.mxu0  ;;  %v3177_v9 = vpop.f32.mrf.mxu1  ;;  %v441_v16 = vld [vmem:[%s4211_s28 + $0x7b0] sm:$0xff] }
 0x24e   : > { %3475 = vst [vmem:[%s4934_s19 + $0x28] sm:$0xff] %v3411_v29  ;;  %v3176_v37 = vadd.f32 %v3175_v11, %v2887_v35  ;;  %v438_v35 = vld [vmem:[%s4211_s28 + $0x798] sm:$0xff] }
 0x24f   : > { %v2889_v39 = vpop.f32.mrf.mxu0  ;;  %v3178_v32 = vpop.f32.mrf.mxu1  ;;  %v442_v11 = vld [vmem:[%s4211_s28 + $0x7b8] sm:$0xff] }
 0x250   : > { %v3412_v53 = vmax.f32 %v3176_v37, 0.0  ;;  %v2890_v24 = vadd.f32 %v2889_v39, %v4636_v34  ;;  %v3850_v37 = vcombine.low %v429_v58, %v433_v27 }
 0x251   : > { %v2891_v63 = vpop.f32.mrf.mxu0  ;;  %v3180_v47 = vpop.f32.mrf.mxu1 }
 0x252   : > { %3476 = vst [vmem:[%s4934_s19 + $0x30] sm:$0xff] %v3412_v53  ;;  %v3179_v4 = vadd.f32 %v3178_v32, %v2890_v24  ;;  %v3859_v53 = vcombine.high %v437_v20, %v441_v16  ;;  %v3861_v32 = vcombine.high %v438_v35, %v442_v11 }
 0x253   : > { %v2894_v62 = vpop.f32.mrf.mxu0  ;;  %3085 = vmatmul.mubr.bf16.gmra.mxu0 %v3842_v48  ;;  %v3183_v46 = vpop.f32.mrf.mxu1  ;;  %3374 = vmatmul.mubr.bf16.gmra.mxu1 %v3844_v21 }
 0x254   : > { %v3413_v52 = vmax.f32 %v3179_v4, 0.0  ;;  %v2895_v14 = vadd.f32 %v2894_v62, %v4641_v43  ;;  %3092 = vmatprep.mubr.bf16.mxu0 %v3851_v25  ;;  %3381 = vmatprep.mubr.bf16.mxu1 %v3853_v44  ;;  %v3852_v43 = vcombine.low %v430_v56, %v434_v36  ;;  %v445_v56 = vld [vmem:[%s4211_s28 + $0x7d0] sm:$0xff]  ;;  %v446_v62 = vld [vmem:[%s4211_s28 + $0x7d8] sm:$0xff] }
 0x255   : > { %v2896_v34 = vpop.f32.mrf.mxu0  ;;  %v3185_v29 = vpop.f32.mrf.mxu1  ;;  %v449_v36 = vld [vmem:[%s4211_s28 + $0x7f0] sm:$0xff] }
 0x256   : > { %3477 = vst [vmem:[%s4934_s19 + $0x38] sm:$0xff] %v3413_v52  ;;  %v3184_v6 = vadd.f32 %v3183_v46, %v2895_v14  ;;  %v450_v52 = vld [vmem:[%s4211_s28 + $0x7f8] sm:$0xff]  ;;  %v3858_v46 = vcombine.low %v437_v20, %v441_v16 }
 0x257   : > { %v2897_v12 = vpop.f32.mrf.mxu0  ;;  %v3186_v48 = vpop.f32.mrf.mxu1 }
 0x258   : > { %v3414_v9 = vmax.f32 %v3184_v6, 0.0  ;;  %v2898_v39 = vadd.f32 %v2897_v12, %v4646_v57  ;;  %v3867_v12 = vcombine.high %v445_v56, %v449_v36 }
 0x259   : > { %v2899_v24 = vpop.f32.mrf.mxu0  ;;  %v3188_v25 = vpop.f32.mrf.mxu1 }
 0x25a   : > { %3478 = vst [vmem:[%s4934_s19 + $0x40] sm:$0xff] %v3414_v9  ;;  %v3187_v21 = vadd.f32 %v3186_v48, %v2898_v39  ;;  %v3869_v9 = vcombine.high %v446_v62, %v450_v52 }
 0x25b   : > { %v2902_v63 = vpop.f32.mrf.mxu0  ;;  %3093 = vmatmul.mubr.bf16.gmra.mxu0 %v3850_v37  ;;  %v3191_v27 = vpop.f32.mrf.mxu1  ;;  %3382 = vmatmul.mubr.bf16.gmra.mxu1 %v3852_v43 }
 0x25c   : > { %v3415_v44 = vmax.f32 %v3187_v21, 0.0  ;;  %v2903_v58 = vadd.f32 %v2902_v63, %v4651_v2  ;;  %3100 = vmatprep.mubr.bf16.mxu0 %v3859_v53  ;;  %3389 = vmatprep.mubr.bf16.mxu1 %v3861_v32  ;;  %v3860_v2 = vcombine.low %v438_v35, %v442_v11  ;;  %v3866_v11 = vcombine.low %v445_v56, %v449_v36 }
 0x25d   : > { %v2904_v57 = vpop.f32.mrf.mxu0  ;;  %v3193_v47 = vpop.f32.mrf.mxu1 }
 0x25e   : > { %3479 = vst [vmem:[%s4934_s19 + $0x48] sm:$0xff] %v3415_v44  ;;  %v3192_v4 = vadd.f32 %v3191_v27, %v2903_v58  ;;  %v3868_v44 = vcombine.low %v446_v62, %v450_v52 }
 0x25f   : > { %v2905_v14 = vpop.f32.mrf.mxu0  ;;  %v3194_v29 = vpop.f32.mrf.mxu1 }
 0x260   : > { %v3416_v34 = vmax.f32 %v3192_v4, 0.0  ;;  %v2906_v6 = vadd.f32 %v2905_v14, %v4656_v15 }
 0x261   : > { %v2907_v37 = vpop.f32.mrf.mxu0  ;;  %v3196_v48 = vpop.f32.mrf.mxu1 }
 0x262   : > { %3480 = vst [vmem:[%s4934_s19 + $0x50] sm:$0xff] %v3416_v34  ;;  %v3195_v39 = vadd.f32 %v3194_v29, %v2906_v6 }
 0x263   : > { %v2910_v43 = vpop.f32.mrf.mxu0  ;;  %3101 = vmatmul.mubr.bf16.gmra.mxu0 %v3858_v46  ;;  %v3199_v32 = vpop.f32.mrf.mxu1  ;;  %3390 = vmatmul.mubr.bf16.gmra.mxu1 %v3860_v2 }
 0x264   : > { %v3417_v53 = vmax.f32 %v3195_v39, 0.0  ;;  %v2911_v24 = vadd.f32 %v2910_v43, %v4661_v26  ;;  %3108 = vmatprep.mubr.bf16.mxu0 %v3867_v12  ;;  %3397 = vmatprep.mubr.bf16.mxu1 %v3869_v9 }
 0x265   : > { %v2912_v20 = vpop.f32.mrf.mxu0  ;;  %v3201_v16 = vpop.f32.mrf.mxu1 }
 0x266   : > { %3481 = vst [vmem:[%s4934_s19 + $0x58] sm:$0xff] %v3417_v53  ;;  %v3200_v15 = vadd.f32 %v3199_v32, %v2911_v24 }
 0x267   : > { %v2913_v35 = vpop.f32.mrf.mxu0  ;;  %v3202_v63 = vpop.f32.mrf.mxu1 }
 0x268   : > { %v3418_v21 = vmax.f32 %v3200_v15, 0.0  ;;  %v2914_v25 = vadd.f32 %v2913_v35, %v4666_v40 }
 0x269   : > { %v2915_v58 = vpop.f32.mrf.mxu0  ;;  %v3204_v27 = vpop.f32.mrf.mxu1 }
 0x26a   : > { %3482 = vst [vmem:[%s4934_s19 + $0x60] sm:$0xff] %v3418_v21  ;;  %v3203_v26 = vadd.f32 %v3202_v63, %v2914_v25 }
 0x26b   : > { %v2918_v57 = vpop.f32.mrf.mxu0  ;;  %3109 = vmatmul.mubr.bf16.gmra.mxu0 %v3866_v11  ;;  %v3207_v14 = vpop.f32.mrf.mxu1  ;;  %3398 = vmatmul.mubr.bf16.gmra.mxu1 %v3868_v44 }
 0x26c   : > { %v3419_v4 = vmax.f32 %v3203_v26, 0.0  ;;  %v2919_v47 = vadd.f32 %v2918_v57, %v4671_v50 }
 0x26d   : > { %v2920_v46 = vpop.f32.mrf.mxu0  ;;  %v3209_v36 = vpop.f32.mrf.mxu1 }
 0x26e   : > { %3483 = vst [vmem:[%s4934_s19 + $0x68] sm:$0xff] %v3419_v4  ;;  %v3208_v56 = vadd.f32 %v3207_v14, %v2919_v47 }
 0x26f   : > { %v2921_v40 = vpop.f32.mrf.mxu0  ;;  %v3210_v52 = vpop.f32.mrf.mxu1 }
 0x270   : > { %v3420_v34 = vmax.f32 %v3208_v56, 0.0  ;;  %v2922_v62 = vadd.f32 %v2921_v40, %v4676_v1 }
 0x271   : > { %v2923_v6 = vpop.f32.mrf.mxu0  ;;  %v3212_v2 = vpop.f32.mrf.mxu1 }
 0x272   : > { %3484 = vst [vmem:[%s4934_s19 + $0x70] sm:$0xff] %v3420_v34  ;;  %v3211_v29 = vadd.f32 %v3210_v52, %v2922_v62 }
 0x273   : > { %v2926_v12 = vpop.f32.mrf.mxu0  ;;  %v3215_v9 = vpop.f32.mrf.mxu1 }
 0x274   : > { %v3421_v37 = vmax.f32 %v3211_v29, 0.0  ;;  %v2927_v50 = vadd.f32 %v2926_v12, %v4681_v10 }
 0x275   : > { %v2928_v39 = vpop.f32.mrf.mxu0  ;;  %v3217_v43 = vpop.f32.mrf.mxu1 }
 0x276   : > { %3485 = vst [vmem:[%s4934_s19 + $0x78] sm:$0xff] %v3421_v37  ;;  %v3216_v48 = vadd.f32 %v3215_v9, %v2927_v50 }
 0x277   : > { %v2929_v53 = vpop.f32.mrf.mxu0  ;;  %v3218_v32 = vpop.f32.mrf.mxu1 }
 0x278   : > { %v3422_v24 = vmax.f32 %v3216_v48, 0.0  ;;  %v2930_v1 = vadd.f32 %v2929_v53, %v4686_v28 }
 0x279   : > { %v2931_v20 = vpop.f32.mrf.mxu0  ;;  %v3220_v16 = vpop.f32.mrf.mxu1 }
 0x27a   : > { %3486 = vst [vmem:[%s4934_s19 + $0x80] sm:$0xff] %v3422_v24  ;;  %v3219_v15 = vadd.f32 %v3218_v32, %v2930_v1 }
 0x27b   : > { %v2934_v35 = vpop.f32.mrf.mxu0  ;;  %v3223_v21 = vpop.f32.mrf.mxu1 }
 0x27c   : > { %v3423_v11 = vmax.f32 %v3219_v15, 0.0  ;;  %v2935_v10 = vadd.f32 %v2934_v35, %v4691_v38 }
 0x27d   : > { %v2936_v25 = vpop.f32.mrf.mxu0  ;;  %v3225_v44 = vpop.f32.mrf.mxu1 }
 0x27e   : > { %3487 = vst [vmem:[%s4934_s19 + $0x88] sm:$0xff] %v3423_v11  ;;  %v3224_v63 = vadd.f32 %v3223_v21, %v2935_v10 }
 0x27f   : > { %v2937_v58 = vpop.f32.mrf.mxu0  ;;  %v3226_v27 = vpop.f32.mrf.mxu1 }
 0x280   : > { %v3424_v26 = vmax.f32 %v3224_v63, 0.0  ;;  %v2938_v28 = vadd.f32 %v2937_v58, %v4696_v54 }
 0x281   : > { %v2939_v57 = vpop.f32.mrf.mxu0  ;;  %v3228_v47 = vpop.f32.mrf.mxu1 }
 0x282   : > { %3488 = vst [vmem:[%s4934_s19 + $0x90] sm:$0xff] %v3424_v26  ;;  %v3227_v4 = vadd.f32 %v3226_v27, %v2938_v28 }
 0x283   : > { %v2942_v14 = vpop.f32.mrf.mxu0  ;;  %v3231_v56 = vpop.f32.mrf.mxu1 }
 0x284   : > { %v3425_v46 = vmax.f32 %v3227_v4, 0.0  ;;  %v2943_v38 = vadd.f32 %v2942_v14, %v4701_v3 }
 0x285   : > { %v2944_v36 = vpop.f32.mrf.mxu0  ;;  %v3233_v34 = vpop.f32.mrf.mxu1 }
 0x286   : > { %3489 = vst [vmem:[%s4934_s19 + $0x98] sm:$0xff] %v3425_v46  ;;  %v3232_v40 = vadd.f32 %v3231_v56, %v2943_v38 }
 0x287   : > { %v2945_v62 = vpop.f32.mrf.mxu0  ;;  %v3234_v6 = vpop.f32.mrf.mxu1 }
 0x288   : > { %v3426_v52 = vmax.f32 %v3232_v40, 0.0  ;;  %v2946_v54 = vadd.f32 %v2945_v62, %v4706_v19 }
 0x289   : > { %v2947_v29 = vpop.f32.mrf.mxu0  ;;  %v3236_v12 = vpop.f32.mrf.mxu1 }
 0x28a   : > { %3490 = vst [vmem:[%s4934_s19 + $0xa0] sm:$0xff] %v3426_v52  ;;  %v3235_v2 = vadd.f32 %v3234_v6, %v2946_v54 }
 0x28b   : > { %v2950_v37 = vpop.f32.mrf.mxu0  ;;  %v3239_v9 = vpop.f32.mrf.mxu1 }
 0x28c   : > { %v3427_v50 = vmax.f32 %v3235_v2, 0.0  ;;  %v2951_v3 = vadd.f32 %v2950_v37, %v4711_v31 }
 0x28d   : > { %v2952_v39 = vpop.f32.mrf.mxu0  ;;  %v3241_v43 = vpop.f32.mrf.mxu1 }
 0x28e   : > { %3491 = vst [vmem:[%s4934_s19 + $0xa8] sm:$0xff] %v3427_v50  ;;  %v3240_v48 = vadd.f32 %v3239_v9, %v2951_v3 }
 0x28f   : > { %v2953_v53 = vpop.f32.mrf.mxu0  ;;  %v3242_v1 = vpop.f32.mrf.mxu1 }
 0x290   : > { %v3428_v24 = vmax.f32 %v3240_v48, 0.0  ;;  %v2954_v19 = vadd.f32 %v2953_v53, %v4716_v49 }
 0x291   : > { %v2955_v32 = vpop.f32.mrf.mxu0  ;;  %v3244_v15 = vpop.f32.mrf.mxu1 }
 0x292   : > { %3492 = vst [vmem:[%s4934_s19 + $0xb0] sm:$0xff] %v3428_v24  ;;  %v3243_v20 = vadd.f32 %v3242_v1, %v2954_v19 }
 0x293   : > { %v2958_v16 = vpop.f32.mrf.mxu0  ;;  %v3247_v11 = vpop.f32.mrf.mxu1 }
 0x294   : > { %v3429_v35 = vmax.f32 %v3243_v20, 0.0  ;;  %v2959_v31 = vadd.f32 %v2958_v16, %v4721_v61 }
 0x295   : > { %v2960_v10 = vpop.f32.mrf.mxu0  ;;  %v3249_v25 = vpop.f32.mrf.mxu1 }
 0x296   : > { %3493 = vst [vmem:[%s4934_s19 + $0xb8] sm:$0xff] %v3429_v35  ;;  %v3248_v21 = vadd.f32 %v3247_v11, %v2959_v31 }
 0x297   : > { %v2961_v63 = vpop.f32.mrf.mxu0  ;;  %v3250_v58 = vpop.f32.mrf.mxu1 }
 0x298   : > { %v3430_v44 = vmax.f32 %v3248_v21, 0.0  ;;  %v2962_v49 = vadd.f32 %v2961_v63, %v4726_v17 }
 0x299   : > { %v2963_v26 = vpop.f32.mrf.mxu0  ;;  %v3252_v27 = vpop.f32.mrf.mxu1 }
 0x29a   : > { %3494 = vst [vmem:[%s4934_s19 + $0xc0] sm:$0xff] %v3430_v44  ;;  %v3251_v28 = vadd.f32 %v3250_v58, %v2962_v49 }
 0x29b   : > { %v2966_v57 = vpop.f32.mrf.mxu0  ;;  %v3255_v47 = vpop.f32.mrf.mxu1 }
 0x29c   : > { %v3431_v4 = vmax.f32 %v3251_v28, 0.0  ;;  %v2967_v61 = vadd.f32 %v2966_v57, %v4731_v30 }
 0x29d   : > { %v2968_v14 = vpop.f32.mrf.mxu0  ;;  %v3257_v38 = vpop.f32.mrf.mxu1 }
 0x29e   : > { %3495 = vst [vmem:[%s4934_s19 + $0xc8] sm:$0xff] %v3431_v4  ;;  %v3256_v46 = vadd.f32 %v3255_v47, %v2967_v61 }
 0x29f   : > { %v2969_v56 = vpop.f32.mrf.mxu0  ;;  %v3258_v40 = vpop.f32.mrf.mxu1 }
 0x2a0   : > { %v3432_v36 = vmax.f32 %v3256_v46, 0.0  ;;  %v2970_v17 = vadd.f32 %v2969_v56, %v4736_v51 }
 0x2a1   : > { %v2971_v34 = vpop.f32.mrf.mxu0  ;;  %v3260_v52 = vpop.f32.mrf.mxu1 }
 0x2a2   : > { %3496 = vst [vmem:[%s4934_s19 + $0xd0] sm:$0xff] %v3432_v36  ;;  %v3259_v62 = vadd.f32 %v3258_v40, %v2970_v17 }
 0x2a3   : > { %v2974_v54 = vpop.f32.mrf.mxu0  ;;  %v3263_v29 = vpop.f32.mrf.mxu1 }
 0x2a4   : > { %v3433_v6 = vmax.f32 %v3259_v62, 0.0  ;;  %v2975_v30 = vadd.f32 %v2974_v54, %v4741_v0 }
 0x2a5   : > { %v2976_v2 = vpop.f32.mrf.mxu0  ;;  %v3265_v37 = vpop.f32.mrf.mxu1 }
 0x2a6   : > { %3497 = vst [vmem:[%s4934_s19 + $0xd8] sm:$0xff] %v3433_v6  ;;  %v3264_v12 = vadd.f32 %v3263_v29, %v2975_v30 }
 0x2a7   : > { %v2977_v50 = vpop.f32.mrf.mxu0  ;;  %v3266_v9 = vpop.f32.mrf.mxu1 }
 0x2a8   : > { %v3434_v3 = vmax.f32 %v3264_v12, 0.0  ;;  %v2978_v51 = vadd.f32 %v2977_v50, %v4746_v22 }
 0x2a9   : > { %v2979_v39 = vpop.f32.mrf.mxu0  ;;  %v3268_v43 = vpop.f32.mrf.mxu1 }
 0x2aa   : > { %3498 = vst [vmem:[%s4934_s19 + $0xe0] sm:$0xff] %v3434_v3  ;;  %v3267_v48 = vadd.f32 %v3266_v9, %v2978_v51 }
 0x2ab   : > { %v2982_v53 = vpop.f32.mrf.mxu0  ;;  %v3271_v19 = vpop.f32.mrf.mxu1 }
 0x2ac   : > { %v3435_v24 = vmax.f32 %v3267_v48, 0.0  ;;  %v2983_v0 = vadd.f32 %v2982_v53, %v4751_v33 }
 0x2ad   : > { %v2984_v1 = vpop.f32.mrf.mxu0  ;;  %v3273_v20 = vpop.f32.mrf.mxu1 }
 0x2ae   : > { %3499 = vst [vmem:[%s4934_s19 + $0xe8] sm:$0xff] %v3435_v24  ;;  %v3272_v32 = vadd.f32 %v3271_v19, %v2983_v0 }
 0x2af   : > { %v2985_v15 = vpop.f32.mrf.mxu0  ;;  %v3274_v35 = vpop.f32.mrf.mxu1 }
 0x2b0   : > { %v3436_v16 = vmax.f32 %v3272_v32, 0.0  ;;  %v2986_v22 = vadd.f32 %v2985_v15, %v4756_v59 }
 0x2b1   : > { %v2987_v31 = vpop.f32.mrf.mxu0  ;;  %v3276_v10 = vpop.f32.mrf.mxu1 }
 0x2b2   : > { %3500 = vst [vmem:[%s4934_s19 + $0xf0] sm:$0xff] %v3436_v16  ;;  %v3275_v11 = vadd.f32 %v3274_v35, %v2986_v22  ;;  %v5126_v10 = vld [vmem:[#allocation5_spill] sm:$0xff] }
 0x2b3   : > { %v2990_v21 = vpop.f32.mrf.mxu0  ;;  %v3279_v63 = vpop.f32.mrf.mxu1 }
 0x2b4   : > { %v3437_v25 = vmax.f32 %v3275_v11, 0.0  ;;  %v2991_v33 = vadd.f32 %v2990_v21, %v4761_v5 }
 0x2b5   : > { %v2992_v44 = vpop.f32.mrf.mxu0  ;;  %v3281_v58 = vpop.f32.mrf.mxu1 }
 0x2b6   : > { %3501 = vst [vmem:[%s4934_s19 + $0xf8] sm:$0xff] %v3437_v25  ;;  %v3280_v49 = vadd.f32 %v3279_v63, %v2991_v33  ;;  %v5127_v58 = vld [vmem:[#allocation6_spill] sm:$0xff] }
 0x2b7   : > { %v2993_v26 = vpop.f32.mrf.mxu0  ;;  %v3282_v27 = vpop.f32.mrf.mxu1 }
 0x2b8   : > { %v3438_v28 = vmax.f32 %v3280_v49, 0.0  ;;  %v2994_v59 = vadd.f32 %v2993_v26, %v4766_v45 }
 0x2b9   : > { %v2995_v57 = vpop.f32.mrf.mxu0  ;;  %v3284_v61 = vpop.f32.mrf.mxu1 }
 0x2ba   : > { %3502 = vst [vmem:[%s4934_s19 + $0x100] sm:$0xff] %v3438_v28  ;;  %v3283_v4 = vadd.f32 %v3282_v27, %v2994_v59  ;;  %v5128_v61 = vld [vmem:[#allocation7_spill] sm:$0xff] }
 0x2bb   : > { %v2998_v47 = vpop.f32.mrf.mxu0  ;;  %v3287_v46 = vpop.f32.mrf.mxu1 }
 0x2bc   : > { %v3439_v14 = vmax.f32 %v3283_v4, 0.0  ;;  %v2999_v5 = vadd.f32 %v2998_v47, %v4771_v41 }
 0x2bd   : > { %v3000_v38 = vpop.f32.mrf.mxu0  ;;  %v3289_v36 = vpop.f32.mrf.mxu1 }
 0x2be   : > { %3503 = vst [vmem:[%s4934_s19 + $0x108] sm:$0xff] %v3439_v14  ;;  %v3288_v56 = vadd.f32 %v3287_v46, %v2999_v5 }
 0x2bf   : > { %v3001_v17 = vpop.f32.mrf.mxu0  ;;  %v3290_v34 = vpop.f32.mrf.mxu1 }
 0x2c0   : > { %v3440_v40 = vmax.f32 %v3288_v56, 0.0  ;;  %v3002_v45 = vadd.f32 %v3001_v17, %v4776_v23  ;;  %v5129_v17 = vld [vmem:[#allocation8_spill] sm:$0xff] }
 0x2c1   : > { %v3003_v62 = vpop.f32.mrf.mxu0  ;;  %v3292_v54 = vpop.f32.mrf.mxu1 }
 0x2c2   : > { %3504 = vst [vmem:[%s4934_s19 + $0x110] sm:$0xff] %v3440_v40  ;;  %v3291_v52 = vadd.f32 %v3290_v34, %v3002_v45 }
 0x2c3   : > { %v3006_v6 = vpop.f32.mrf.mxu0  ;;  %v3295_v29 = vpop.f32.mrf.mxu1 }
 0x2c4   : > { %v3441_v30 = vmax.f32 %v3291_v52, 0.0  ;;  %v3007_v41 = vadd.f32 %v3006_v6, %v4781_v13 }
 0x2c5   : > { %v3008_v2 = vpop.f32.mrf.mxu0  ;;  %v3297_v37 = vpop.f32.mrf.mxu1 }
 0x2c6   : > { %3505 = vst [vmem:[%s4934_s19 + $0x118] sm:$0xff] %v3441_v30  ;;  %v3296_v12 = vadd.f32 %v3295_v29, %v3007_v41  ;;  %v5130_v30 = vld [vmem:[#allocation9_spill] sm:$0xff] }
 0x2c7   : > { %v3009_v50 = vpop.f32.mrf.mxu0  ;;  %v3298_v51 = vpop.f32.mrf.mxu1 }
 0x2c8   : > { %v3442_v3 = vmax.f32 %v3296_v12, 0.0  ;;  %v3010_v23 = vadd.f32 %v3009_v50, %v4786_v60 }
 0x2c9   : > { %v3011_v9 = vpop.f32.mrf.mxu0  ;;  %v3300_v48 = vpop.f32.mrf.mxu1 }
 0x2ca   : > { %3506 = vst [vmem:[%s4934_s19 + $0x120] sm:$0xff] %v3442_v3  ;;  %v3299_v39 = vadd.f32 %v3298_v51, %v3010_v23  ;;  %v5131_v23 = vld [vmem:[#allocation10_spill] sm:$0xff] }
 0x2cb   : > { %v3014_v43 = vpop.f32.mrf.mxu0  ;;  %v3303_v24 = vpop.f32.mrf.mxu1 }
 0x2cc   : > { %v3443_v53 = vmax.f32 %v3299_v39, 0.0  ;;  %v3015_v13 = vadd.f32 %v3014_v43, %v4791_v55 }
 0x2cd   : > { %v3016_v0 = vpop.f32.mrf.mxu0  ;;  %v3305_v1 = vpop.f32.mrf.mxu1 }
 0x2ce   : > { %3507 = vst [vmem:[%s4934_s19 + $0x128] sm:$0xff] %v3443_v53  ;;  %v3304_v19 = vadd.f32 %v3303_v24, %v3015_v13  ;;  %v5132_v24 = vld [vmem:[#allocation11_spill] sm:$0xff] }
 0x2cf   : > { %v3017_v32 = vpop.f32.mrf.mxu0  ;;  %v3306_v15 = vpop.f32.mrf.mxu1 }
 0x2d0   : > { %v3444_v20 = vmax.f32 %v3304_v19, 0.0  ;;  %v3018_v60 = vadd.f32 %v3017_v32, %v4796_v8 }
 0x2d1   : > { %v3019_v16 = vpop.f32.mrf.mxu0  ;;  %v3308_v35 = vpop.f32.mrf.mxu1 }
 0x2d2   : > { %3508 = vst [vmem:[%s4934_s19 + $0x130] sm:$0xff] %v3444_v20  ;;  %v3307_v22 = vadd.f32 %v3306_v15, %v3018_v60  ;;  %v5133_v16 = vld [vmem:[#allocation12_spill] sm:$0xff] }
 0x2d3   : > { %v3022_v31 = vpop.f32.mrf.mxu0  ;;  %v3311_v21 = vpop.f32.mrf.mxu1 }
 0x2d4   : > { %v3445_v11 = vmax.f32 %v3307_v22, 0.0  ;;  %v3023_v55 = vadd.f32 %v3022_v31, %v5126_v10 }
 0x2d5   : > { %v3024_v25 = vpop.f32.mrf.mxu0  ;;  %v3313_v63 = vpop.f32.mrf.mxu1 }
 0x2d6   : > { %3509 = vst [vmem:[%s4934_s19 + $0x138] sm:$0xff] %v3445_v11  ;;  %v3312_v33 = vadd.f32 %v3311_v21, %v3023_v55  ;;  %v5134_v25 = vld [vmem:[#allocation13_spill] sm:$0xff] }
 0x2d7   : > { %v3025_v44 = vpop.f32.mrf.mxu0  ;;  %v3314_v26 = vpop.f32.mrf.mxu1 }
 0x2d8   : > { %v3446_v49 = vmax.f32 %v3312_v33, 0.0  ;;  %v3026_v8 = vadd.f32 %v3025_v44, %v5127_v58 }
 0x2d9   : > { %v3027_v28 = vpop.f32.mrf.mxu0  ;;  %v3316_v27 = vpop.f32.mrf.mxu1 }
 0x2da   : > { %3510 = vst [vmem:[%s4934_s19 + $0x140] sm:$0xff] %v3446_v49  ;;  %v3315_v59 = vadd.f32 %v3314_v26, %v3026_v8  ;;  %v5135_v28 = vld [vmem:[#allocation14_spill] sm:$0xff] }
 0x2db   : > { %v3030_v57 = vpop.f32.mrf.mxu0  ;;  %v3319_v14 = vpop.f32.mrf.mxu1 }
 0x2dc   : > { %v3447_v4 = vmax.f32 %v3315_v59, 0.0  ;;  %v3031_v47 = vadd.f32 %v3030_v57, %v5128_v61 }
 0x2dd   : > { %v3032_v5 = vpop.f32.mrf.mxu0  ;;  %v3321_v38 = vpop.f32.mrf.mxu1 }
 0x2de   : > { %3511 = vst [vmem:[%s4934_s19 + $0x148] sm:$0xff] %v3447_v4  ;;  %v3320_v46 = vadd.f32 %v3319_v14, %v3031_v47  ;;  %v5136_v5 = vld [vmem:[#allocation15_spill] sm:$0xff] }
 0x2df   : > { %v3033_v56 = vpop.f32.mrf.mxu0  ;;  %v3322_v45 = vpop.f32.mrf.mxu1 }
 0x2e0   : > { %v3448_v36 = vmax.f32 %v3320_v46, 0.0  ;;  %v3034_v40 = vadd.f32 %v3033_v56, %v5129_v17 }
 0x2e1   : > { %v3035_v34 = vpop.f32.mrf.mxu0  ;;  %v3324_v52 = vpop.f32.mrf.mxu1 }
 0x2e2   : > { %3512 = vst [vmem:[%s4934_s19 + $0x150] sm:$0xff] %v3448_v36  ;;  %v3323_v62 = vadd.f32 %v3322_v45, %v3034_v40  ;;  %v5137_v34 = vld [vmem:[#allocation16_spill] sm:$0xff] }
 0x2e3   : > { %v3038_v54 = vpop.f32.mrf.mxu0  ;;  %v3327_v29 = vpop.f32.mrf.mxu1 }
 0x2e4   : > { %v3449_v6 = vmax.f32 %v3323_v62, 0.0  ;;  %v3039_v41 = vadd.f32 %v3038_v54, %v5130_v30 }
 0x2e5   : > { %v3040_v2 = vpop.f32.mrf.mxu0  ;;  %v3329_v37 = vpop.f32.mrf.mxu1 }
 0x2e6   : > { %3513 = vst [vmem:[%s4934_s19 + $0x158] sm:$0xff] %v3449_v6  ;;  %v3328_v12 = vadd.f32 %v3327_v29, %v3039_v41  ;;  %v5138_v2 = vld [vmem:[#allocation17_spill] sm:$0xff] }
 0x2e7   : > { %v3041_v50 = vpop.f32.mrf.mxu0  ;;  %v3330_v9 = vpop.f32.mrf.mxu1 }
 0x2e8   : > { %v3450_v3 = vmax.f32 %v3328_v12, 0.0  ;;  %v3042_v51 = vadd.f32 %v3041_v50, %v5131_v23 }
 0x2e9   : > { %v3043_v39 = vpop.f32.mrf.mxu0  ;;  %v3332_v43 = vpop.f32.mrf.mxu1 }
 0x2ea   : > { %3514 = vst [vmem:[%s4934_s19 + $0x160] sm:$0xff] %v3450_v3  ;;  %v3331_v48 = vadd.f32 %v3330_v9, %v3042_v51  ;;  %v5139_v39 = vld [vmem:[#allocation18_spill] sm:$0xff] }
 0x2eb   : > { %v3046_v53 = vpop.f32.mrf.mxu0  ;;  %v3335_v19 = vpop.f32.mrf.mxu1 }
 0x2ec   : > { %v3451_v13 = vmax.f32 %v3331_v48, 0.0  ;;  %v3047_v0 = vadd.f32 %v3046_v53, %v5132_v24 }
 0x2ed   : > { %v3048_v1 = vpop.f32.mrf.mxu0  ;;  %v3337_v20 = vpop.f32.mrf.mxu1 }
 0x2ee   : > { %3515 = vst [vmem:[%s4934_s19 + $0x168] sm:$0xff] %v3451_v13  ;;  %v3336_v32 = vadd.f32 %v3335_v19, %v3047_v0  ;;  %v5140_v1 = vld [vmem:[#allocation19_spill] sm:$0xff] }
 0x2ef   : > { %v3049_v60 = vpop.f32.mrf.mxu0  ;;  %v3338_v35 = vpop.f32.mrf.mxu1 }
 0x2f0   : > { %v3452_v15 = vmax.f32 %v3336_v32, 0.0  ;;  %v3050_v22 = vadd.f32 %v3049_v60, %v5133_v16 }
 0x2f1   : > { %v3051_v31 = vpop.f32.mrf.mxu0  ;;  %v3340_v10 = vpop.f32.mrf.mxu1 }
 0x2f2   : > { %3516 = vst [vmem:[%s4934_s19 + $0x170] sm:$0xff] %v3452_v15  ;;  %v3339_v11 = vadd.f32 %v3338_v35, %v3050_v22  ;;  %v5141_v31 = vld [vmem:[#allocation20_spill] sm:$0xff] }
 0x2f3   : > { %v3054_v55 = vpop.f32.mrf.mxu0  ;;  %v3343_v63 = vpop.f32.mrf.mxu1 }
 0x2f4   : > { %v3453_v21 = vmax.f32 %v3339_v11, 0.0  ;;  %v3055_v33 = vadd.f32 %v3054_v55, %v5134_v25 }
 0x2f5   : > { %v3056_v44 = vpop.f32.mrf.mxu0  ;;  %v3345_v58 = vpop.f32.mrf.mxu1 }
 0x2f6   : > { %3517 = vst [vmem:[%s4934_s19 + $0x178] sm:$0xff] %v3453_v21  ;;  %v3344_v49 = vadd.f32 %v3343_v63, %v3055_v33  ;;  %v5142_v44 = vld [vmem:[#allocation21_spill] sm:$0xff] }
 0x2f7   : > { %v3057_v8 = vpop.f32.mrf.mxu0  ;;  %v3346_v27 = vpop.f32.mrf.mxu1 }
 0x2f8   : > { %v3454_v26 = vmax.f32 %v3344_v49, 0.0  ;;  %v3058_v59 = vadd.f32 %v3057_v8, %v5135_v28 }
 0x2f9   : > { %v3059_v57 = vpop.f32.mrf.mxu0  ;;  %v3348_v61 = vpop.f32.mrf.mxu1 }
 0x2fa   : > { %3518 = vst [vmem:[%s4934_s19 + $0x180] sm:$0xff] %v3454_v26  ;;  %v3347_v4 = vadd.f32 %v3346_v27, %v3058_v59 }
 0x2fb   : > { %v3062_v47 = vpop.f32.mrf.mxu0  ;;  %v3351_v38 = vpop.f32.mrf.mxu1 }
 0x2fc   : > { %v3455_v14 = vmax.f32 %v3347_v4, 0.0  ;;  %v3063_v46 = vadd.f32 %v3062_v47, %v5136_v5 }
 0x2fd   : > { %v3064_v56 = vpop.f32.mrf.mxu0  ;;  %v3353_v17 = vpop.f32.mrf.mxu1 }
 0x2fe   : > { %3519 = vst [vmem:[%s4934_s19 + $0x188] sm:$0xff] %v3455_v14  ;;  %v3352_v36 = vadd.f32 %v3351_v38, %v3063_v46  ;;  %v5143_v38 = vld [vmem:[#allocation22_spill] sm:$0xff] }
 0x2ff   : > { %v3065_v40 = vpop.f32.mrf.mxu0  ;;  %v3354_v52 = vpop.f32.mrf.mxu1 }
 0x300   : > { %v3456_v45 = vmax.f32 %v3352_v36, 0.0  ;;  %v3066_v62 = vadd.f32 %v3065_v40, %v5137_v34 }
 0x301   : > { %v3067_v54 = vpop.f32.mrf.mxu0  ;;  %v3356_v30 = vpop.f32.mrf.mxu1 }
 0x302   : > { %3520 = vst [vmem:[%s4934_s19 + $0x190] sm:$0xff] %v3456_v45  ;;  %v3355_v6 = vadd.f32 %v3354_v52, %v3066_v62  ;;  %v5144_v52 = vld [vmem:[#allocation23_spill] sm:$0xff] }
 0x303   : > { %v3070_v41 = vpop.f32.mrf.mxu0  ;;  %v3359_v37 = vpop.f32.mrf.mxu1 }
 0x304   : > { %v3457_v29 = vmax.f32 %v3355_v6, 0.0  ;;  %v3071_v12 = vadd.f32 %v3070_v41, %v5138_v2 }
 0x305   : > { %v3072_v50 = vpop.f32.mrf.mxu0  ;;  %v3361_v23 = vpop.f32.mrf.mxu1 }
 0x306   : > { %3521 = vst [vmem:[%s4934_s19 + $0x198] sm:$0xff] %v3457_v29  ;;  %v3360_v3 = vadd.f32 %v3359_v37, %v3071_v12  ;;  %v5145_v12 = vld [vmem:[#allocation24_spill] sm:$0xff] }
 0x307   : > { %v3073_v51 = vpop.f32.mrf.mxu0  ;;  %v3362_v43 = vpop.f32.mrf.mxu1 }
 0x308   : > { %v3458_v9 = vmax.f32 %v3360_v3, 0.0  ;;  %v3074_v48 = vadd.f32 %v3073_v51, %v5139_v39 }
 0x309   : > { %v3075_v53 = vpop.f32.mrf.mxu0  ;;  %v3364_v24 = vpop.f32.mrf.mxu1 }
 0x30a   : > { %3522 = vst [vmem:[%s4934_s19 + $0x1a0] sm:$0xff] %v3458_v9  ;;  %v3363_v13 = vadd.f32 %v3362_v43, %v3074_v48  ;;  %v5146_v48 = vld [vmem:[#allocation25_spill] sm:$0xff] }
 0x30b   : > { %v3078_v0 = vpop.f32.mrf.mxu0  ;;  %v3367_v20 = vpop.f32.mrf.mxu1 }
 0x30c   : > { %v3459_v19 = vmax.f32 %v3363_v13, 0.0  ;;  %v3079_v32 = vadd.f32 %v3078_v0, %v5140_v1 }
 0x30d   : > { %v3080_v60 = vpop.f32.mrf.mxu0  ;;  %v3369_v16 = vpop.f32.mrf.mxu1 }
 0x30e   : > { %3523 = vst [vmem:[%s4934_s19 + $0x1a8] sm:$0xff] %v3459_v19  ;;  %v3368_v15 = vadd.f32 %v3367_v20, %v3079_v32 }
 0x30f   : > { %v3081_v22 = vpop.f32.mrf.mxu0  ;;  %v3370_v10 = vpop.f32.mrf.mxu1 }
 0x310   : > { %v3460_v35 = vmax.f32 %v3368_v15, 0.0  ;;  %v3082_v11 = vadd.f32 %v3081_v22, %v5141_v31 }
 0x311   : > { %v3083_v55 = vpop.f32.mrf.mxu0  ;;  %v3372_v25 = vpop.f32.mrf.mxu1 }
 0x312   : > { %3524 = vst [vmem:[%s4934_s19 + $0x1b0] sm:$0xff] %v3460_v35  ;;  %v3371_v21 = vadd.f32 %v3370_v10, %v3082_v11 }
 0x313   : > { %v3086_v33 = vpop.f32.mrf.mxu0  ;;  %v3375_v58 = vpop.f32.mrf.mxu1 }
 0x314   : > { %v3461_v63 = vmax.f32 %v3371_v21, 0.0  ;;  %v3087_v49 = vadd.f32 %v3086_v33, %v5142_v44 }
 0x315   : > { %v3088_v8 = vpop.f32.mrf.mxu0  ;;  %v3377_v28 = vpop.f32.mrf.mxu1 }
 0x316   : > { %3525 = vst [vmem:[%s4934_s19 + $0x1b8] sm:$0xff] %v3461_v63  ;;  %v3376_v26 = vadd.f32 %v3375_v58, %v3087_v49 }
 0x317   : > { %v3089_v59 = vpop.f32.mrf.mxu0  ;;  %v3378_v4 = vpop.f32.mrf.mxu1 }
 0x318   : > { %v3462_v27 = vmax.f32 %v3376_v26, 0.0  ;;  %v3090_v57 = vadd.f32 %v3089_v59, %v4891_v42 }
 0x319   : > { %v3091_v61 = vpop.f32.mrf.mxu0  ;;  %v3380_v14 = vpop.f32.mrf.mxu1 }
 0x31a   : > { %3526 = vst [vmem:[%s4934_s19 + $0x1c0] sm:$0xff] %v3462_v27  ;;  %v3379_v47 = vadd.f32 %v3378_v4, %v3090_v57 }
 0x31b   : > { %v3094_v5 = vpop.f32.mrf.mxu0  ;;  %v3383_v36 = vpop.f32.mrf.mxu1 }
 0x31c   : > { %v3463_v46 = vmax.f32 %v3379_v47, 0.0  ;;  %v3095_v56 = vadd.f32 %v3094_v5, %v5143_v38 }
 0x31d   : > { %v3096_v17 = vpop.f32.mrf.mxu0  ;;  %v3385_v45 = vpop.f32.mrf.mxu1 }
 0x31e   : > { %3527 = vst [vmem:[%s4934_s19 + $0x1c8] sm:$0xff] %v3463_v46  ;;  %v3384_v40 = vadd.f32 %v3383_v36, %v3095_v56 }
 0x31f   : > { %v3097_v34 = vpop.f32.mrf.mxu0  ;;  %v3386_v54 = vpop.f32.mrf.mxu1 }
 0x320   : > { %v3464_v62 = vmax.f32 %v3384_v40, 0.0  ;;  %v3098_v42 = vadd.f32 %v3097_v34, %v5144_v52 }
 0x321   : > { %v3099_v6 = vpop.f32.mrf.mxu0  ;;  %v3388_v41 = vpop.f32.mrf.mxu1 }
 0x322   : > { %3528 = vst [vmem:[%s4934_s19 + $0x1d0] sm:$0xff] %v3464_v62  ;;  %v3387_v30 = vadd.f32 %v3386_v54, %v3098_v42 }
 0x323   : > { %v3102_v29 = vpop.f32.mrf.mxu0  ;;  %v3391_v50 = vpop.f32.mrf.mxu1 }
 0x324   : > { %v3465_v2 = vmax.f32 %v3387_v30, 0.0  ;;  %v3103_v37 = vadd.f32 %v3102_v29, %v5145_v12 }
 0x325   : > { %v3104_v3 = vpop.f32.mrf.mxu0  ;;  %v3393_v51 = vpop.f32.mrf.mxu1 }
 0x326   : > { %3529 = vst [vmem:[%s4934_s19 + $0x1d8] sm:$0xff] %v3465_v2  ;;  %v3392_v23 = vadd.f32 %v3391_v50, %v3103_v37 }
 0x327   : > { %v3105_v9 = vpop.f32.mrf.mxu0  ;;  %v3394_v53 = vpop.f32.mrf.mxu1 }
 0x328   : > { %v3466_v39 = vmax.f32 %v3392_v23, 0.0  ;;  %v3106_v43 = vadd.f32 %v3105_v9, %v5146_v48 }
 0x329   : > { %v3107_v13 = vpop.f32.mrf.mxu0  ;;  %v3396_v0 = vpop.f32.mrf.mxu1 }
 0x32a   : > { %3530 = vst [vmem:[%s4934_s19 + $0x1e0] sm:$0xff] %v3466_v39  ;;  %v3395_v24 = vadd.f32 %v3394_v53, %v3106_v43 }
 0x32b   : > { %v3110_v19 = vpop.f32.mrf.mxu0  ;;  %v3399_v20 = vpop.f32.mrf.mxu1 }
 0x32c   : > { %v3467_v1 = vmax.f32 %v3395_v24, 0.0  ;;  %v3111_v32 = vadd.f32 %v3110_v19, %v4918_v18 }
 0x32d   : > { %v3112_v60 = vpop.f32.mrf.mxu0  ;;  %v3401_v16 = vpop.f32.mrf.mxu1 }
 0x32e   : > { %3531 = vst [vmem:[%s4934_s19 + $0x1e8] sm:$0xff] %v3467_v1  ;;  %v3400_v15 = vadd.f32 %v3399_v20, %v3111_v32 }
 0x32f   : > { %v3113_v22 = vpop.f32.mrf.mxu0  ;;  %v3402_v11 = vpop.f32.mrf.mxu1 }
 0x330   : > { %v3468_v35 = vmax.f32 %v3400_v15, 0.0  ;;  %v3114_v31 = vadd.f32 %v3113_v22, %v4924_v7 }
 0x331   : > { %v3115_v10 = vpop.f32.mrf.mxu0  ;;  %v3404_v21 = vpop.f32.mrf.mxu1 }
 0x332   : > { %3532 = vst [vmem:[%s4934_s19 + $0x1f0] sm:$0xff] %v3468_v35  ;;  %v3403_v55 = vadd.f32 %v3402_v11, %v3114_v31 }
 0x334   : > { %v3469_v25 = vmax.f32 %v3403_v55, 0.0 }
 0x336   : > { %3533 = vst [vmem:[%s4934_s19 + $0x1f8] sm:$0xff] %v3469_v25 }
 0x337 PF: > { %p13_p9 = scmp.ge.s32.totalorder %s4153_s17, 4   ;;  %s5147_s12 = smov %s4099_s13 }
 0x338   : > { %s5148_s13 = smov %s4103_s14  ;;  %s5149_s14 = smov %s4163_s20 }
 0x339   : > { %s5150_s15 = smov %s4153_s17  ;;  %15 = sbr.rel (!%p13_p9) target bundleno = 3 (0x3), region = 72 }
 0x33e   :  { %3556 = vsyncpa [#allocation3], 1 }
 0x33f   :  { %3558 = vsyncpa [#allocation3 + $0x1], 1 }

</bundles_post_ra>
